<compile_context>
chip_gen: v7x
topology: tpu7x:2x2x1
jax: 0.10.0
libtpu: 0.0.40
codegen_flags: <defaults>
</compile_context>

<pallas_src>
import math
import functools

import jax
import jax.numpy as jnp
from jax.experimental import pallas as pl
from jax.experimental.pallas import tpu as pltpu


_VMEM = pl.BlockSpec(memory_space=pltpu.MemorySpace.VMEM)

# dot_general dimension numbers for A @ B^T (same pattern as TPU flash attn).
_TRANS_B = (((1,), (1,)), ((), ()))


def _bf(v):
    # bf16 operands for the MXU; accumulation stays f32 via
    # preferred_element_type. ReLU / tanh / softmax / readout stay in f32.
    return v.astype(jnp.bfloat16)


def _readout_rows(h_pool, num_graphs, k):
    # [global_max_pool || global_mean_pool] over contiguous, equal-size
    # per-graph slabs (static slices + sublane reductions).
    inv_k = 1.0 / float(k)
    rows = []
    for g in range(num_graphs):
        slab = h_pool[g * k:(g + 1) * k, :]
        mx = jnp.max(slab, axis=0, keepdims=True)
        mean = jnp.sum(slab, axis=0, keepdims=True) * inv_k
        rows.append(jnp.concatenate([mx, mean], axis=1))
    return jnp.concatenate(rows, axis=0)                    # (B, 2F)


def _scores(h, p_row):
    # TopKPooling score: tanh(h . p / ||p||); p_row is (1, F), pre-normalised
    # on the host. Column form (N,1) scales the node features in-kernel;
    # lane-dense row form (1,N) is the stored output for the host top_k.
    s_col = jnp.tanh(jnp.sum(h * p_row, axis=1, keepdims=True))
    s_row = jnp.tanh(jax.lax.dot_general(
        p_row, h, _TRANS_B, preferred_element_type=jnp.float32))
    return s_col, s_row


# -----------------------------------------------------------------------------
# K1: conv1 + ReLU + score + scale
# -----------------------------------------------------------------------------
def _conv1_kernel(adj_ref, x_ref, wrel_ref, wroot_ref, b_ref, p_ref,
                  hs_ref, srow_ref):
    adj = adj_ref[...]
    x = x_ref[...]
    # GraphConv 'add': aggregate neighbours first (F_in << F_out -> fewer FLOPs).
    aggr = jnp.dot(_bf(adj), _bf(x), preferred_element_type=jnp.float32)
    h = (jnp.dot(_bf(aggr), _bf(wrel_ref[...]), preferred_element_type=jnp.float32)
         + jnp.dot(_bf(x), _bf(wroot_ref[...]), preferred_element_type=jnp.float32)
         + b_ref[...])
    h = jnp.maximum(h, 0.0)
    s_col, s_row = _scores(h, p_ref[...])
    srow_ref[...] = s_row
    # Scale before selection: (h*s)[perm] == h[perm]*s[perm].
    hs_ref[...] = h * s_col


def conv1_fused(adj, x, wrel, wroot, b, p_row):
    # TODO(synk): for realistic N, add a (row, k) grid with bf16 adj tiles,
    # f32 accumulator scratch and dimension_semantics=("parallel","arbitrary").
    n = x.shape[0]
    f_out = wrel.shape[1]
    return pl.pallas_call(
        _conv1_kernel,
        out_shape=(jax.ShapeDtypeStruct((n, f_out), jnp.float32),
                   jax.ShapeDtypeStruct((1, n), jnp.float32)),
        in_specs=[_VMEM] * 6,
        out_specs=(_VMEM, _VMEM),
    )(adj, x, wrel, wroot, b, p_row)


# -----------------------------------------------------------------------------
# K2/K3: pool (one-hot matmul gather) + readout + next conv + ReLU + score
# -----------------------------------------------------------------------------
def _pool_conv_kernel(sel_ref, selt_ref, h_ref, adj_ref,
                      wrel_ref, wroot_ref, b_ref, p_ref,
                      read_ref, hs_ref, adjp_ref, srow_ref,
                      *, num_graphs, k):
    sel = sel_ref[...]                          # (K, Nprev) one-hot rows
    h_prev = h_ref[...]                         # (Nprev, F) score-scaled feats
    adj_prev = adj_ref[...]

    # TopKPooling gather as matmuls: x[perm] and adj[perm][:, perm].
    h_pool = jnp.dot(sel, h_prev, preferred_element_type=jnp.float32)  # exact
    tmp = jnp.dot(_bf(sel), _bf(adj_prev), preferred_element_type=jnp.float32)
    adj_pool = jnp.dot(_bf(tmp), _bf(selt_ref[...]),
                       preferred_element_type=jnp.float32)
    adjp_ref[...] = adj_pool

    # Readout of this layer's pooled features.
    read_ref[...] = _readout_rows(h_pool, num_graphs, k)

    # Next GraphConv + ReLU on the pooled graph.
    aggr = jnp.dot(_bf(adj_pool), _bf(h_pool), preferred_element_type=jnp.float32)
    h = (jnp.dot(_bf(aggr), _bf(wrel_ref[...]), preferred_element_type=jnp.float32)
         + jnp.dot(_bf(h_pool), _bf(wroot_ref[...]), preferred_element_type=jnp.float32)
         + b_ref[...])
    h = jnp.maximum(h, 0.0)

    s_col, s_row = _scores(h, p_ref[...])
    srow_ref[...] = s_row
    hs_ref[...] = h * s_col


def pool_conv_fused(sel, sel_t, h_prev, adj_prev, wrel, wroot, b, p_row,
                    num_graphs, k):
    kk = sel.shape[0]                           # num_graphs * k
    f = h_prev.shape[1]
    kernel = functools.partial(_pool_conv_kernel, num_graphs=num_graphs, k=k)
    return pl.pallas_call(
        kernel,
        out_shape=(jax.ShapeDtypeStruct((num_graphs, 2 * f), jnp.float32),
                   jax.ShapeDtypeStruct((kk, f), jnp.float32),
                   jax.ShapeDtypeStruct((kk, kk), jnp.float32),
                   jax.ShapeDtypeStruct((1, kk), jnp.float32)),
        in_specs=[_VMEM] * 8,
        out_specs=(_VMEM,) * 4,
    )(sel, sel_t, h_prev, adj_prev, wrel, wroot, b, p_row)


# -----------------------------------------------------------------------------
# K4: final pool + readout + (x1 + x2 + x3) + MLP head + log_softmax
# -----------------------------------------------------------------------------
def _pool_mlp_kernel(sel_ref, h_ref, x1_ref, x2_ref,
                     w1_ref, b1_ref, w2_ref, b2_ref, w3_ref, b3_ref,
                     o_ref, *, num_graphs, k):
    h_pool = jnp.dot(sel_ref[...], h_ref[...], preferred_element_type=jnp.float32)
    x3 = _readout_rows(h_pool, num_graphs, k)
    xcat = x1_ref[...] + x2_ref[...] + x3

    h = jnp.maximum(
        jnp.dot(_bf(xcat), _bf(w1_ref[...]), preferred_element_type=jnp.float32)
        + b1_ref[...], 0.0)
    # TODO(synk): dropout(p=0.5) is identity here (eval mode, training=False).
    h = jnp.maximum(
        jnp.dot(_bf(h), _bf(w2_ref[...]), preferred_element_type=jnp.float32)
        + b2_ref[...], 0.0)
    logits = (jnp.dot(_bf(h), _bf(w3_ref[...]), preferred_element_type=jnp.float32)
              + b3_ref[...])
    m = jnp.max(logits, axis=-1, keepdims=True)
    z = logits - m
    lse = jnp.log(jnp.sum(jnp.exp(z), axis=-1, keepdims=True))
    o_ref[...] = z - lse                                    # log_softmax


def pool_mlp_fused(sel, h_prev, x1, x2, w1, b1, w2, b2, w3, b3, num_graphs, k):
    num_classes = w3.shape[1]
    kernel = functools.partial(_pool_mlp_kernel, num_graphs=num_graphs, k=k)
    return pl.pallas_call(
        kernel,
        out_shape=jax.ShapeDtypeStruct((num_graphs, num_classes), jnp.float32),
        in_specs=[_VMEM] * 10,
        out_specs=_VMEM,
    )(sel, h_prev, x1, x2, w1, b1, w2, b2, w3, b3)


# -----------------------------------------------------------------------------
# Host glue: top-k index selection -> one-hot selection matrices (no gathers)
# -----------------------------------------------------------------------------
def topk_selection(scores_row, n_per_graph, num_graphs, ratio=0.8):
    k = int(math.ceil(ratio * n_per_graph))
    s = scores_row.reshape(num_graphs, n_per_graph)
    _, idx = jax.lax.top_k(s, k)                            # descending, like PyG
    perm = (idx + (jnp.arange(num_graphs) * n_per_graph)[:, None]).reshape(-1)
    n_prev = num_graphs * n_per_graph
    sel = (perm[:, None] == jnp.arange(n_prev)[None, :]).astype(jnp.float32)
    return sel, sel.T, k


def _p_row(p):
    # Pre-normalise the TopK projection vector once in the wrapper.
    return (p / jnp.sqrt(jnp.sum(p * p))).reshape(1, -1)


def net_forward(params, x, adj, num_graphs, n0):
    p1, p2, p3 = (_p_row(params["pool1_p"]), _p_row(params["pool2_p"]),
                  _p_row(params["pool3_p"]))

    h1s, s1 = conv1_fused(adj, x, params["conv1_wrel"], params["conv1_wroot"],
                          params["conv1_b"], p1)
    sel1, sel1_t, k1 = topk_selection(s1, n0, num_graphs)

    x1, h2s, adj1, s2 = pool_conv_fused(sel1, sel1_t, h1s, adj,
                                        params["conv2_wrel"], params["conv2_wroot"],
                                        params["conv2_b"], p2, num_graphs, k1)
    sel2, sel2_t, k2 = topk_selection(s2, k1, num_graphs)

    x2, h3s, _adj2, s3 = pool_conv_fused(sel2, sel2_t, h2s, adj1,
                                         params["conv3_wrel"], params["conv3_wroot"],
                                         params["conv3_b"], p3, num_graphs, k2)
    sel3, _sel3_t, k3 = topk_selection(s3, k2, num_graphs)

    return pool_mlp_fused(sel3, h3s, x1, x2,
                          params["lin1_w"], params["lin1_b"],
                          params["lin2_w"], params["lin2_b"],
                          params["lin3_w"], params["lin3_b"],
                          num_graphs, k3)


# -----------------------------------------------------------------------------
# Deterministic parameter init (synthetic; shapes follow the PyTorch __init__)
# -----------------------------------------------------------------------------
def init_params(key, feat_pad, num_classes, hidden=128):
    ks = jax.random.split(key, 20)
    w = lambda k, shape, scale: jax.random.normal(k, shape, jnp.float32) * scale
    return {
        "conv1_wrel": w(ks[0], (feat_pad, hidden), 0.2),
        "conv1_wroot": w(ks[1], (feat_pad, hidden), 0.2),
        "conv1_b": w(ks[2], (1, hidden), 0.1),
        "conv2_wrel": w(ks[3], (hidden, hidden), 0.05),
        "conv2_wroot": w(ks[4], (hidden, hidden), 0.05),
        "conv2_b": w(ks[5], (1, hidden), 0.05),
        "conv3_wrel": w(ks[6], (hidden, hidden), 0.05),
        "conv3_wroot": w(ks[7], (hidden, hidden), 0.05),
        "conv3_b": w(ks[8], (1, hidden), 0.05),
        "pool1_p": w(ks[9], (hidden, 1), 0.1),
        "pool2_p": w(ks[10], (hidden, 1), 0.1),
        "pool3_p": w(ks[11], (hidden, 1), 0.1),
        "lin1_w": w(ks[12], (2 * hidden, hidden), 0.05),
        "lin1_b": w(ks[13], (1, hidden), 0.05),
        "lin2_w": w(ks[14], (hidden, 64), 0.05),
        "lin2_b": w(ks[15], (1, 64), 0.05),
        "lin3_w": w(ks[16], (64, num_classes), 0.05),
        "lin3_b": w(ks[17], (1, num_classes), 0.05),
    }


if __name__ == "__main__":
    NUM_GRAPHS = 2          # graphs per batch, equal node counts -> static TopK shapes
    NODES_PER_GRAPH = 10
    NUM_FEATURES = 3        # ENZYMES: dataset.num_features == 3
    FEAT_PAD = 8            # zero-pad feature dim (padded W rows multiply zeros)
    NUM_CLASSES = 6         # ENZYMES: dataset.num_classes == 6

    key = jax.random.PRNGKey(0)
    k_x, k_p = jax.random.split(key)

    x_raw = jax.random.normal(k_x, (NUM_GRAPHS * NODES_PER_GRAPH, NUM_FEATURES), jnp.float32)
    x = jnp.concatenate(
        [x_raw, jnp.zeros((x_raw.shape[0], FEAT_PAD - NUM_FEATURES), jnp.float32)], axis=1)

    # undirected ring + one chord per graph; batch = block-diagonal adjacency
    def ring_adj(n):
        a = jnp.zeros((n, n), jnp.float32)
        i = jnp.arange(n)
        a = a.at[i, (i + 1) % n].set(1.0)
        a = a.at[(i + 1) % n, i].set(1.0)
        a = a.at[0, n // 2].set(1.0)
        a = a.at[n // 2, 0].set(1.0)
        return a

    single = ring_adj(NODES_PER_GRAPH)
    adj = jax.scipy.linalg.block_diag(single, single)

    params = init_params(k_p, FEAT_PAD, NUM_CLASSES)

    fwd = jax.jit(functools.partial(net_forward, num_graphs=NUM_GRAPHS, n0=NODES_PER_GRAPH))
    out = fwd(params, x, adj)
    out = jax.block_until_ready(out)

    assert out.shape == (NUM_GRAPHS, NUM_CLASSES)
    assert bool(jnp.all(jnp.isfinite(out)))
    # log_softmax rows must (log-)sum to ~1
    assert bool(jnp.allclose(jnp.sum(jnp.exp(out), axis=-1), 1.0, atol=1e-4))
    print("KERNEL_OK")
</pallas_src>

<mosaic_0001>
module attributes {stable_mosaic.version = 11 : i64} {
  func.func @_conv1_kernel(%arg0: memref<20x20xf32, #tpu.memory_space<vmem>>, %arg1: memref<20x8xf32, #tpu.memory_space<vmem>>, %arg2: memref<8x128xf32, #tpu.memory_space<vmem>>, %arg3: memref<8x128xf32, #tpu.memory_space<vmem>>, %arg4: memref<1x128xf32, #tpu.memory_space<vmem>>, %arg5: memref<1x128xf32, #tpu.memory_space<vmem>>, %arg6: memref<20x128xf32, #tpu.memory_space<vmem>>, %arg7: memref<1x20xf32, #tpu.memory_space<vmem>>) attributes {dimension_semantics = [], scalar_prefetch = 0 : i64, scratch_operands = 0 : i64, tpu.core_type = #tpu.core_type<tc>} {
    %c0 = arith.constant 0 : index
    %c0_0 = arith.constant 0 : index
    %0 = vector.load %arg0[%c0, %c0_0] : memref<20x20xf32, #tpu.memory_space<vmem>>, vector<20x20xf32>
    %c0_1 = arith.constant 0 : index
    %c0_2 = arith.constant 0 : index
    %1 = vector.load %arg1[%c0_1, %c0_2] : memref<20x8xf32, #tpu.memory_space<vmem>>, vector<20x8xf32>
    %2 = arith.truncf %0 : vector<20x20xf32> to vector<20x20xbf16>
    %3 = arith.truncf %1 : vector<20x8xf32> to vector<20x8xbf16>
    %cst = arith.constant dense<0.000000e+00> : vector<20x8xf32>
    %4 = tpu.matmul %2, %3, %cst {dimension_numbers = #tpu.dot_dimension_numbers<[1], [0], [0], [1], [0, 0, 1, 1], [], []>} : vector<20x20xbf16>, vector<20x8xbf16>, vector<20x8xf32> -> vector<20x8xf32>
    %5 = arith.truncf %4 : vector<20x8xf32> to vector<20x8xbf16>
    %c0_3 = arith.constant 0 : index
    %c0_4 = arith.constant 0 : index
    %6 = vector.load %arg2[%c0_3, %c0_4] : memref<8x128xf32, #tpu.memory_space<vmem>>, vector<8x128xf32>
    %7 = arith.truncf %6 : vector<8x128xf32> to vector<8x128xbf16>
    %cst_5 = arith.constant dense<0.000000e+00> : vector<20x128xf32>
    %8 = tpu.matmul %5, %7, %cst_5 {dimension_numbers = #tpu.dot_dimension_numbers<[1], [0], [0], [1], [0, 0, 1, 1], [], []>} : vector<20x8xbf16>, vector<8x128xbf16>, vector<20x128xf32> -> vector<20x128xf32>
    %9 = arith.truncf %1 : vector<20x8xf32> to vector<20x8xbf16>
    %c0_6 = arith.constant 0 : index
    %c0_7 = arith.constant 0 : index
    %10 = vector.load %arg3[%c0_6, %c0_7] : memref<8x128xf32, #tpu.memory_space<vmem>>, vector<8x128xf32>
    %11 = arith.truncf %10 : vector<8x128xf32> to vector<8x128xbf16>
    %cst_8 = arith.constant dense<0.000000e+00> : vector<20x128xf32>
    %12 = tpu.matmul %9, %11, %cst_8 {dimension_numbers = #tpu.dot_dimension_numbers<[1], [0], [0], [1], [0, 0, 1, 1], [], []>} : vector<20x8xbf16>, vector<8x128xbf16>, vector<20x128xf32> -> vector<20x128xf32>
    %13 = arith.addf %8, %12 : vector<20x128xf32>
    %c0_9 = arith.constant 0 : index
    %c0_10 = arith.constant 0 : index
    %14 = vector.load %arg4[%c0_9, %c0_10] : memref<1x128xf32, #tpu.memory_space<vmem>>, vector<1x128xf32>
    %15 = vector.broadcast %14 : vector<1x128xf32> to vector<20x128xf32>
    %16 = arith.addf %13, %15 : vector<20x128xf32>
    %cst_11 = arith.constant 0.000000e+00 : f32
    %17 = vector.broadcast %cst_11 : f32 to vector<20x128xf32>
    %18 = arith.maximumf %16, %17 : vector<20x128xf32>
    %c0_12 = arith.constant 0 : index
    %c0_13 = arith.constant 0 : index
    %19 = vector.load %arg5[%c0_12, %c0_13] : memref<1x128xf32, #tpu.memory_space<vmem>>, vector<1x128xf32>
    %20 = vector.broadcast %19 : vector<1x128xf32> to vector<20x128xf32>
    %21 = arith.mulf %18, %20 : vector<20x128xf32>
    %cst_14 = arith.constant dense<0.000000e+00> : vector<20xf32>
    %22 = vector.multi_reduction <add>, %21, %cst_14 [1] : vector<20x128xf32> to vector<20xf32>
    %23 = vector.shape_cast %22 : vector<20xf32> to vector<20x1xf32>
    %24 = math.tanh %23 : vector<20x1xf32>
    %cst_15 = arith.constant dense<0.000000e+00> : vector<1x20xf32>
    %25 = tpu.matmul %19, %18, %cst_15 {dimension_numbers = #tpu.dot_dimension_numbers<[1], [1], [0], [0], [0, 0, 1, 0], [], []>} : vector<1x128xf32>, vector<20x128xf32>, vector<1x20xf32> -> vector<1x20xf32>
    %26 = math.tanh %25 : vector<1x20xf32>
    %c0_16 = arith.constant 0 : index
    %c0_17 = arith.constant 0 : index
    %27 = vector.load %arg7[%c0_16, %c0_17] : memref<1x20xf32, #tpu.memory_space<vmem>>, vector<1x20xf32>
    tpu.vector_store %arg7[%c0_16, %c0_17], %26 {strides = array<i32>} : memref<1x20xf32, #tpu.memory_space<vmem>>, vector<1x20xf32>,
    %28 = vector.broadcast %24 : vector<20x1xf32> to vector<20x128xf32>
    %29 = arith.mulf %18, %28 : vector<20x128xf32>
    %c0_18 = arith.constant 0 : index
    %c0_19 = arith.constant 0 : index
    %30 = vector.load %arg6[%c0_18, %c0_19] : memref<20x128xf32, #tpu.memory_space<vmem>>, vector<20x128xf32>
    tpu.vector_store %arg6[%c0_18, %c0_19], %29 {strides = array<i32>} : memref<20x128xf32, #tpu.memory_space<vmem>>, vector<20x128xf32>,
    return
  }
}

module attributes {stable_mosaic.version = 11 : i64} {
  func.func @_pool_conv_kernel(%arg0: memref<16x20xf32, #tpu.memory_space<vmem>>, %arg1: memref<20x16xf32, #tpu.memory_space<vmem>>, %arg2: memref<20x128xf32, #tpu.memory_space<vmem>>, %arg3: memref<20x20xf32, #tpu.memory_space<vmem>>, %arg4: memref<128x128xf32, #tpu.memory_space<vmem>>, %arg5: memref<128x128xf32, #tpu.memory_space<vmem>>, %arg6: memref<1x128xf32, #tpu.memory_space<vmem>>, %arg7: memref<1x128xf32, #tpu.memory_space<vmem>>, %arg8: memref<2x256xf32, #tpu.memory_space<vmem>>, %arg9: memref<16x128xf32, #tpu.memory_space<vmem>>, %arg10: memref<16x16xf32, #tpu.memory_space<vmem>>, %arg11: memref<1x16xf32, #tpu.memory_space<vmem>>) attributes {dimension_semantics = [], scalar_prefetch = 0 : i64, scratch_operands = 0 : i64, tpu.core_type = #tpu.core_type<tc>} {
    %c0 = arith.constant 0 : index
    %c0_0 = arith.constant 0 : index
    %0 = vector.load %arg0[%c0, %c0_0] : memref<16x20xf32, #tpu.memory_space<vmem>>, vector<16x20xf32>
    %c0_1 = arith.constant 0 : index
    %c0_2 = arith.constant 0 : index
    %1 = vector.load %arg2[%c0_1, %c0_2] : memref<20x128xf32, #tpu.memory_space<vmem>>, vector<20x128xf32>
    %c0_3 = arith.constant 0 : index
    %c0_4 = arith.constant 0 : index
    %2 = vector.load %arg3[%c0_3, %c0_4] : memref<20x20xf32, #tpu.memory_space<vmem>>, vector<20x20xf32>
    %cst = arith.constant dense<0.000000e+00> : vector<16x128xf32>
    %3 = tpu.matmul %0, %1, %cst {dimension_numbers = #tpu.dot_dimension_numbers<[1], [0], [0], [1], [0, 0, 1, 1], [], []>} : vector<16x20xf32>, vector<20x128xf32>, vector<16x128xf32> -> vector<16x128xf32>
    %4 = arith.truncf %0 : vector<16x20xf32> to vector<16x20xbf16>
    %5 = arith.truncf %2 : vector<20x20xf32> to vector<20x20xbf16>
    %cst_5 = arith.constant dense<0.000000e+00> : vector<16x20xf32>
    %6 = tpu.matmul %4, %5, %cst_5 {dimension_numbers = #tpu.dot_dimension_numbers<[1], [0], [0], [1], [0, 0, 1, 1], [], []>} : vector<16x20xbf16>, vector<20x20xbf16>, vector<16x20xf32> -> vector<16x20xf32>
    %7 = arith.truncf %6 : vector<16x20xf32> to vector<16x20xbf16>
    %c0_6 = arith.constant 0 : index
    %c0_7 = arith.constant 0 : index
    %8 = vector.load %arg1[%c0_6, %c0_7] : memref<20x16xf32, #tpu.memory_space<vmem>>, vector<20x16xf32>
    %9 = arith.truncf %8 : vector<20x16xf32> to vector<20x16xbf16>
    %cst_8 = arith.constant dense<0.000000e+00> : vector<16x16xf32>
    %10 = tpu.matmul %7, %9, %cst_8 {dimension_numbers = #tpu.dot_dimension_numbers<[1], [0], [0], [1], [0, 0, 1, 1], [], []>} : vector<16x20xbf16>, vector<20x16xbf16>, vector<16x16xf32> -> vector<16x16xf32>
    %c0_9 = arith.constant 0 : index
    %c0_10 = arith.constant 0 : index
    %11 = vector.load %arg10[%c0_9, %c0_10] : memref<16x16xf32, #tpu.memory_space<vmem>>, vector<16x16xf32>
    tpu.vector_store %arg10[%c0_9, %c0_10], %10 {strides = array<i32>} : memref<16x16xf32, #tpu.memory_space<vmem>>, vector<16x16xf32>,
    %12 = vector.extract_strided_slice %3 {offsets = [0, 0], sizes = [8, 128], strides = [1, 1]} : vector<16x128xf32> to vector<8x128xf32>
    %cst_11 = arith.constant dense<0xFF800000> : vector<128xf32>
    %13 = vector.multi_reduction <maximumf>, %12, %cst_11 [0] : vector<8x128xf32> to vector<128xf32>
    %14 = vector.shape_cast %13 : vector<128xf32> to vector<1x128xf32>
    %cst_12 = arith.constant dense<0.000000e+00> : vector<128xf32>
    %15 = vector.multi_reduction <add>, %12, %cst_12 [0] : vector<8x128xf32> to vector<128xf32>
    %16 = vector.shape_cast %15 : vector<128xf32> to vector<1x128xf32>
    %cst_13 = arith.constant 1.250000e-01 : f32
    %17 = vector.broadcast %cst_13 : f32 to vector<1x128xf32>
    %18 = arith.mulf %16, %17 : vector<1x128xf32>
    %19 = tpu.concatenate %14, %18 in 1 : vector<1x128xf32>, vector<1x128xf32> -> vector<1x256xf32>
    %20 = vector.extract_strided_slice %3 {offsets = [8, 0], sizes = [8, 128], strides = [1, 1]} : vector<16x128xf32> to vector<8x128xf32>
    %cst_14 = arith.constant dense<0xFF800000> : vector<128xf32>
    %21 = vector.multi_reduction <maximumf>, %20, %cst_14 [0] : vector<8x128xf32> to vector<128xf32>
    %22 = vector.shape_cast %21 : vector<128xf32> to vector<1x128xf32>
    %cst_15 = arith.constant dense<0.000000e+00> : vector<128xf32>
    %23 = vector.multi_reduction <add>, %20, %cst_15 [0] : vector<8x128xf32> to vector<128xf32>
    %24 = vector.shape_cast %23 : vector<128xf32> to vector<1x128xf32>
    %cst_16 = arith.constant 1.250000e-01 : f32
    %25 = vector.broadcast %cst_16 : f32 to vector<1x128xf32>
    %26 = arith.mulf %24, %25 : vector<1x128xf32>
    %27 = tpu.concatenate %22, %26 in 1 : vector<1x128xf32>, vector<1x128xf32> -> vector<1x256xf32>
    %28 = tpu.concatenate %19, %27 in 0 : vector<1x256xf32>, vector<1x256xf32> -> vector<2x256xf32>
    %c0_17 = arith.constant 0 : index
    %c0_18 = arith.constant 0 : index
    %29 = vector.load %arg8[%c0_17, %c0_18] : memref<2x256xf32, #tpu.memory_space<vmem>>, vector<2x256xf32>
    tpu.vector_store %arg8[%c0_17, %c0_18], %28 {strides = array<i32>} : memref<2x256xf32, #tpu.memory_space<vmem>>, vector<2x256xf32>,
    %30 = arith.truncf %10 : vector<16x16xf32> to vector<16x16xbf16>
    %31 = arith.truncf %3 : vector<16x128xf32> to vector<16x128xbf16>
    %cst_19 = arith.constant dense<0.000000e+00> : vector<16x128xf32>
    %32 = tpu.matmul %30, %31, %cst_19 {dimension_numbers = #tpu.dot_dimension_numbers<[1], [0], [0], [1], [0, 0, 1, 1], [], []>} : vector<16x16xbf16>, vector<16x128xbf16>, vector<16x128xf32> -> vector<16x128xf32>
    %33 = arith.truncf %32 : vector<16x128xf32> to vector<16x128xbf16>
    %c0_20 = arith.constant 0 : index
    %c0_21 = arith.constant 0 : index
    %34 = vector.load %arg4[%c0_20, %c0_21] : memref<128x128xf32, #tpu.memory_space<vmem>>, vector<128x128xf32>
    %35 = arith.truncf %34 : vector<128x128xf32> to vector<128x128xbf16>
    %cst_22 = arith.constant dense<0.000000e+00> : vector<16x128xf32>
    %36 = tpu.matmul %33, %35, %cst_22 {dimension_numbers = #tpu.dot_dimension_numbers<[1], [0], [0], [1], [0, 0, 1, 1], [], []>} : vector<16x128xbf16>, vector<128x128xbf16>, vector<16x128xf32> -> vector<16x128xf32>
    %37 = arith.truncf %3 : vector<16x128xf32> to vector<16x128xbf16>
    %c0_23 = arith.constant 0 : index
    %c0_24 = arith.constant 0 : index
    %38 = vector.load %arg5[%c0_23, %c0_24] : memref<128x128xf32, #tpu.memory_space<vmem>>, vector<128x128xf32>
    %39 = arith.truncf %38 : vector<128x128xf32> to vector<128x128xbf16>
    %cst_25 = arith.constant dense<0.000000e+00> : vector<16x128xf32>
    %40 = tpu.matmul %37, %39, %cst_25 {dimension_numbers = #tpu.dot_dimension_numbers<[1], [0], [0], [1], [0, 0, 1, 1], [], []>} : vector<16x128xbf16>, vector<128x128xbf16>, vector<16x128xf32> -> vector<16x128xf32>
    %41 = arith.addf %36, %40 : vector<16x128xf32>
    %c0_26 = arith.constant 0 : index
    %c0_27 = arith.constant 0 : index
    %42 = vector.load %arg6[%c0_26, %c0_27] : memref<1x128xf32, #tpu.memory_space<vmem>>, vector<1x128xf32>
    %43 = vector.broadcast %42 : vector<1x128xf32> to vector<16x128xf32>
    %44 = arith.addf %41, %43 : vector<16x128xf32>
    %cst_28 = arith.constant 0.000000e+00 : f32
    %45 = vector.broadcast %cst_28 : f32 to vector<16x128xf32>
    %46 = arith.maximumf %44, %45 : vector<16x128xf32>
    %c0_29 = arith.constant 0 : index
    %c0_30 = arith.constant 0 : index
    %47 = vector.load %arg7[%c0_29, %c0_30] : memref<1x128xf32, #tpu.memory_space<vmem>>, vector<1x128xf32>
    %48 = vector.broadcast %47 : vector<1x128xf32> to vector<16x128xf32>
    %49 = arith.mulf %46, %48 : vector<16x128xf32>
    %cst_31 = arith.constant dense<0.000000e+00> : vector<16xf32>
    %50 = vector.multi_reduction <add>, %49, %cst_31 [1] : vector<16x128xf32> to vector<16xf32>
    %51 = vector.shape_cast %50 : vector<16xf32> to vector<16x1xf32>
    %52 = math.tanh %51 : vector<16x1xf32>
    %cst_32 = arith.constant dense<0.000000e+00> : vector<1x16xf32>
    %53 = tpu.matmul %47, %46, %cst_32 {dimension_numbers = #tpu.dot_dimension_numbers<[1], [1], [0], [0], [0, 0, 1, 0], [], []>} : vector<1x128xf32>, vector<16x128xf32>, vector<1x16xf32> -> vector<1x16xf32>
    %54 = math.tanh %53 : vector<1x16xf32>
    %c0_33 = arith.constant 0 : index
    %c0_34 = arith.constant 0 : index
    %55 = vector.load %arg11[%c0_33, %c0_34] : memref<1x16xf32, #tpu.memory_space<vmem>>, vector<1x16xf32>
    tpu.vector_store %arg11[%c0_33, %c0_34], %54 {strides = array<i32>} : memref<1x16xf32, #tpu.memory_space<vmem>>, vector<1x16xf32>,
    %56 = vector.broadcast %52 : vector<16x1xf32> to vector<16x128xf32>
    %57 = arith.mulf %46, %56 : vector<16x128xf32>
    %c0_35 = arith.constant 0 : index
    %c0_36 = arith.constant 0 : index
    %58 = vector.load %arg9[%c0_35, %c0_36] : memref<16x128xf32, #tpu.memory_space<vmem>>, vector<16x128xf32>
    tpu.vector_store %arg9[%c0_35, %c0_36], %57 {strides = array<i32>} : memref<16x128xf32, #tpu.memory_space<vmem>>, vector<16x128xf32>,
    return
  }
}

module attributes {stable_mosaic.version = 11 : i64} {
  func.func @_pool_conv_kernel(%arg0: memref<14x16xf32, #tpu.memory_space<vmem>>, %arg1: memref<16x14xf32, #tpu.memory_space<vmem>>, %arg2: memref<16x128xf32, #tpu.memory_space<vmem>>, %arg3: memref<16x16xf32, #tpu.memory_space<vmem>>, %arg4: memref<128x128xf32, #tpu.memory_space<vmem>>, %arg5: memref<128x128xf32, #tpu.memory_space<vmem>>, %arg6: memref<1x128xf32, #tpu.memory_space<vmem>>, %arg7: memref<1x128xf32, #tpu.memory_space<vmem>>, %arg8: memref<2x256xf32, #tpu.memory_space<vmem>>, %arg9: memref<14x128xf32, #tpu.memory_space<vmem>>, %arg10: memref<14x14xf32, #tpu.memory_space<vmem>>, %arg11: memref<1x14xf32, #tpu.memory_space<vmem>>) attributes {dimension_semantics = [], scalar_prefetch = 0 : i64, scratch_operands = 0 : i64, tpu.core_type = #tpu.core_type<tc>} {
    %c0 = arith.constant 0 : index
    %c0_0 = arith.constant 0 : index
    %0 = vector.load %arg0[%c0, %c0_0] : memref<14x16xf32, #tpu.memory_space<vmem>>, vector<14x16xf32>
    %c0_1 = arith.constant 0 : index
    %c0_2 = arith.constant 0 : index
    %1 = vector.load %arg2[%c0_1, %c0_2] : memref<16x128xf32, #tpu.memory_space<vmem>>, vector<16x128xf32>
    %c0_3 = arith.constant 0 : index
    %c0_4 = arith.constant 0 : index
    %2 = vector.load %arg3[%c0_3, %c0_4] : memref<16x16xf32, #tpu.memory_space<vmem>>, vector<16x16xf32>
    %cst = arith.constant dense<0.000000e+00> : vector<14x128xf32>
    %3 = tpu.matmul %0, %1, %cst {dimension_numbers = #tpu.dot_dimension_numbers<[1], [0], [0], [1], [0, 0, 1, 1], [], []>} : vector<14x16xf32>, vector<16x128xf32>, vector<14x128xf32> -> vector<14x128xf32>
    %4 = arith.truncf %0 : vector<14x16xf32> to vector<14x16xbf16>
    %5 = arith.truncf %2 : vector<16x16xf32> to vector<16x16xbf16>
    %cst_5 = arith.constant dense<0.000000e+00> : vector<14x16xf32>
    %6 = tpu.matmul %4, %5, %cst_5 {dimension_numbers = #tpu.dot_dimension_numbers<[1], [0], [0], [1], [0, 0, 1, 1], [], []>} : vector<14x16xbf16>, vector<16x16xbf16>, vector<14x16xf32> -> vector<14x16xf32>
    %7 = arith.truncf %6 : vector<14x16xf32> to vector<14x16xbf16>
    %c0_6 = arith.constant 0 : index
    %c0_7 = arith.constant 0 : index
    %8 = vector.load %arg1[%c0_6, %c0_7] : memref<16x14xf32, #tpu.memory_space<vmem>>, vector<16x14xf32>
    %9 = arith.truncf %8 : vector<16x14xf32> to vector<16x14xbf16>
    %cst_8 = arith.constant dense<0.000000e+00> : vector<14x14xf32>
    %10 = tpu.matmul %7, %9, %cst_8 {dimension_numbers = #tpu.dot_dimension_numbers<[1], [0], [0], [1], [0, 0, 1, 1], [], []>} : vector<14x16xbf16>, vector<16x14xbf16>, vector<14x14xf32> -> vector<14x14xf32>
    %c0_9 = arith.constant 0 : index
    %c0_10 = arith.constant 0 : index
    %11 = vector.load %arg10[%c0_9, %c0_10] : memref<14x14xf32, #tpu.memory_space<vmem>>, vector<14x14xf32>
    tpu.vector_store %arg10[%c0_9, %c0_10], %10 {strides = array<i32>} : memref<14x14xf32, #tpu.memory_space<vmem>>, vector<14x14xf32>,
    %12 = vector.extract_strided_slice %3 {offsets = [0, 0], sizes = [7, 128], strides = [1, 1]} : vector<14x128xf32> to vector<7x128xf32>
    %cst_11 = arith.constant dense<0xFF800000> : vector<128xf32>
    %13 = vector.multi_reduction <maximumf>, %12, %cst_11 [0] : vector<7x128xf32> to vector<128xf32>
    %14 = vector.shape_cast %13 : vector<128xf32> to vector<1x128xf32>
    %cst_12 = arith.constant dense<0.000000e+00> : vector<128xf32>
    %15 = vector.multi_reduction <add>, %12, %cst_12 [0] : vector<7x128xf32> to vector<128xf32>
    %16 = vector.shape_cast %15 : vector<128xf32> to vector<1x128xf32>
    %cst_13 = arith.constant 0.142857149 : f32
    %17 = vector.broadcast %cst_13 : f32 to vector<1x128xf32>
    %18 = arith.mulf %16, %17 : vector<1x128xf32>
    %19 = tpu.concatenate %14, %18 in 1 : vector<1x128xf32>, vector<1x128xf32> -> vector<1x256xf32>
    %20 = vector.extract_strided_slice %3 {offsets = [7, 0], sizes = [7, 128], strides = [1, 1]} : vector<14x128xf32> to vector<7x128xf32>
    %cst_14 = arith.constant dense<0xFF800000> : vector<128xf32>
    %21 = vector.multi_reduction <maximumf>, %20, %cst_14 [0] : vector<7x128xf32> to vector<128xf32>
    %22 = vector.shape_cast %21 : vector<128xf32> to vector<1x128xf32>
    %cst_15 = arith.constant dense<0.000000e+00> : vector<128xf32>
    %23 = vector.multi_reduction <add>, %20, %cst_15 [0] : vector<7x128xf32> to vector<128xf32>
    %24 = vector.shape_cast %23 : vector<128xf32> to vector<1x128xf32>
    %cst_16 = arith.constant 0.142857149 : f32
    %25 = vector.broadcast %cst_16 : f32 to vector<1x128xf32>
    %26 = arith.mulf %24, %25 : vector<1x128xf32>
    %27 = tpu.concatenate %22, %26 in 1 : vector<1x128xf32>, vector<1x128xf32> -> vector<1x256xf32>
    %28 = tpu.concatenate %19, %27 in 0 : vector<1x256xf32>, vector<1x256xf32> -> vector<2x256xf32>
    %c0_17 = arith.constant 0 : index
    %c0_18 = arith.constant 0 : index
    %29 = vector.load %arg8[%c0_17, %c0_18] : memref<2x256xf32, #tpu.memory_space<vmem>>, vector<2x256xf32>
    tpu.vector_store %arg8[%c0_17, %c0_18], %28 {strides = array<i32>} : memref<2x256xf32, #tpu.memory_space<vmem>>, vector<2x256xf32>,
    %30 = arith.truncf %10 : vector<14x14xf32> to vector<14x14xbf16>
    %31 = arith.truncf %3 : vector<14x128xf32> to vector<14x128xbf16>
    %cst_19 = arith.constant dense<0.000000e+00> : vector<14x128xf32>
    %32 = tpu.matmul %30, %31, %cst_19 {dimension_numbers = #tpu.dot_dimension_numbers<[1], [0], [0], [1], [0, 0, 1, 1], [], []>} : vector<14x14xbf16>, vector<14x128xbf16>, vector<14x128xf32> -> vector<14x128xf32>
    %33 = arith.truncf %32 : vector<14x128xf32> to vector<14x128xbf16>
    %c0_20 = arith.constant 0 : index
    %c0_21 = arith.constant 0 : index
    %34 = vector.load %arg4[%c0_20, %c0_21] : memref<128x128xf32, #tpu.memory_space<vmem>>, vector<128x128xf32>
    %35 = arith.truncf %34 : vector<128x128xf32> to vector<128x128xbf16>
    %cst_22 = arith.constant dense<0.000000e+00> : vector<14x128xf32>
    %36 = tpu.matmul %33, %35, %cst_22 {dimension_numbers = #tpu.dot_dimension_numbers<[1], [0], [0], [1], [0, 0, 1, 1], [], []>} : vector<14x128xbf16>, vector<128x128xbf16>, vector<14x128xf32> -> vector<14x128xf32>
    %37 = arith.truncf %3 : vector<14x128xf32> to vector<14x128xbf16>
    %c0_23 = arith.constant 0 : index
    %c0_24 = arith.constant 0 : index
    %38 = vector.load %arg5[%c0_23, %c0_24] : memref<128x128xf32, #tpu.memory_space<vmem>>, vector<128x128xf32>
    %39 = arith.truncf %38 : vector<128x128xf32> to vector<128x128xbf16>
    %cst_25 = arith.constant dense<0.000000e+00> : vector<14x128xf32>
    %40 = tpu.matmul %37, %39, %cst_25 {dimension_numbers = #tpu.dot_dimension_numbers<[1], [0], [0], [1], [0, 0, 1, 1], [], []>} : vector<14x128xbf16>, vector<128x128xbf16>, vector<14x128xf32> -> vector<14x128xf32>
    %41 = arith.addf %36, %40 : vector<14x128xf32>
    %c0_26 = arith.constant 0 : index
    %c0_27 = arith.constant 0 : index
    %42 = vector.load %arg6[%c0_26, %c0_27] : memref<1x128xf32, #tpu.memory_space<vmem>>, vector<1x128xf32>
    %43 = vector.broadcast %42 : vector<1x128xf32> to vector<14x128xf32>
    %44 = arith.addf %41, %43 : vector<14x128xf32>
    %cst_28 = arith.constant 0.000000e+00 : f32
    %45 = vector.broadcast %cst_28 : f32 to vector<14x128xf32>
    %46 = arith.maximumf %44, %45 : vector<14x128xf32>
    %c0_29 = arith.constant 0 : index
    %c0_30 = arith.constant 0 : index
    %47 = vector.load %arg7[%c0_29, %c0_30] : memref<1x128xf32, #tpu.memory_space<vmem>>, vector<1x128xf32>
    %48 = vector.broadcast %47 : vector<1x128xf32> to vector<14x128xf32>
    %49 = arith.mulf %46, %48 : vector<14x128xf32>
    %cst_31 = arith.constant dense<0.000000e+00> : vector<14xf32>
    %50 = vector.multi_reduction <add>, %49, %cst_31 [1] : vector<14x128xf32> to vector<14xf32>
    %51 = vector.shape_cast %50 : vector<14xf32> to vector<14x1xf32>
    %52 = math.tanh %51 : vector<14x1xf32>
    %cst_32 = arith.constant dense<0.000000e+00> : vector<1x14xf32>
    %53 = tpu.matmul %47, %46, %cst_32 {dimension_numbers = #tpu.dot_dimension_numbers<[1], [1], [0], [0], [0, 0, 1, 0], [], []>} : vector<1x128xf32>, vector<14x128xf32>, vector<1x14xf32> -> vector<1x14xf32>
    %54 = math.tanh %53 : vector<1x14xf32>
    %c0_33 = arith.constant 0 : index
    %c0_34 = arith.constant 0 : index
    %55 = vector.load %arg11[%c0_33, %c0_34] : memref<1x14xf32, #tpu.memory_space<vmem>>, vector<1x14xf32>
    tpu.vector_store %arg11[%c0_33, %c0_34], %54 {strides = array<i32>} : memref<1x14xf32, #tpu.memory_space<vmem>>, vector<1x14xf32>,
    %56 = vector.broadcast %52 : vector<14x1xf32> to vector<14x128xf32>
    %57 = arith.mulf %46, %56 : vector<14x128xf32>
    %c0_35 = arith.constant 0 : index
    %c0_36 = arith.constant 0 : index
    %58 = vector.load %arg9[%c0_35, %c0_36] : memref<14x128xf32, #tpu.memory_space<vmem>>, vector<14x128xf32>
    tpu.vector_store %arg9[%c0_35, %c0_36], %57 {strides = array<i32>} : memref<14x128xf32, #tpu.memory_space<vmem>>, vector<14x128xf32>,
    return
  }
}

module attributes {stable_mosaic.version = 11 : i64} {
  func.func @_pool_mlp_kernel(%arg0: memref<12x14xf32, #tpu.memory_space<vmem>>, %arg1: memref<14x128xf32, #tpu.memory_space<vmem>>, %arg2: memref<2x256xf32, #tpu.memory_space<vmem>>, %arg3: memref<2x256xf32, #tpu.memory_space<vmem>>, %arg4: memref<256x128xf32, #tpu.memory_space<vmem>>, %arg5: memref<1x128xf32, #tpu.memory_space<vmem>>, %arg6: memref<128x64xf32, #tpu.memory_space<vmem>>, %arg7: memref<1x64xf32, #tpu.memory_space<vmem>>, %arg8: memref<64x6xf32, #tpu.memory_space<vmem>>, %arg9: memref<1x6xf32, #tpu.memory_space<vmem>>, %arg10: memref<2x6xf32, #tpu.memory_space<vmem>>) attributes {dimension_semantics = [], scalar_prefetch = 0 : i64, scratch_operands = 0 : i64, tpu.core_type = #tpu.core_type<tc>} {
    %c0 = arith.constant 0 : index
    %c0_0 = arith.constant 0 : index
    %0 = vector.load %arg0[%c0, %c0_0] : memref<12x14xf32, #tpu.memory_space<vmem>>, vector<12x14xf32>
    %c0_1 = arith.constant 0 : index
    %c0_2 = arith.constant 0 : index
    %1 = vector.load %arg1[%c0_1, %c0_2] : memref<14x128xf32, #tpu.memory_space<vmem>>, vector<14x128xf32>
    %cst = arith.constant dense<0.000000e+00> : vector<12x128xf32>
    %2 = tpu.matmul %0, %1, %cst {dimension_numbers = #tpu.dot_dimension_numbers<[1], [0], [0], [1], [0, 0, 1, 1], [], []>} : vector<12x14xf32>, vector<14x128xf32>, vector<12x128xf32> -> vector<12x128xf32>
    %3 = vector.extract_strided_slice %2 {offsets = [0, 0], sizes = [6, 128], strides = [1, 1]} : vector<12x128xf32> to vector<6x128xf32>
    %cst_3 = arith.constant dense<0xFF800000> : vector<128xf32>
    %4 = vector.multi_reduction <maximumf>, %3, %cst_3 [0] : vector<6x128xf32> to vector<128xf32>
    %5 = vector.shape_cast %4 : vector<128xf32> to vector<1x128xf32>
    %cst_4 = arith.constant dense<0.000000e+00> : vector<128xf32>
    %6 = vector.multi_reduction <add>, %3, %cst_4 [0] : vector<6x128xf32> to vector<128xf32>
    %7 = vector.shape_cast %6 : vector<128xf32> to vector<1x128xf32>
    %cst_5 = arith.constant 0.166666672 : f32
    %8 = vector.broadcast %cst_5 : f32 to vector<1x128xf32>
    %9 = arith.mulf %7, %8 : vector<1x128xf32>
    %10 = tpu.concatenate %5, %9 in 1 : vector<1x128xf32>, vector<1x128xf32> -> vector<1x256xf32>
    %11 = vector.extract_strided_slice %2 {offsets = [6, 0], sizes = [6, 128], strides = [1, 1]} : vector<12x128xf32> to vector<6x128xf32>
    %cst_6 = arith.constant dense<0xFF800000> : vector<128xf32>
    %12 = vector.multi_reduction <maximumf>, %11, %cst_6 [0] : vector<6x128xf32> to vector<128xf32>
    %13 = vector.shape_cast %12 : vector<128xf32> to vector<1x128xf32>
    %cst_7 = arith.constant dense<0.000000e+00> : vector<128xf32>
    %14 = vector.multi_reduction <add>, %11, %cst_7 [0] : vector<6x128xf32> to vector<128xf32>
    %15 = vector.shape_cast %14 : vector<128xf32> to vector<1x128xf32>
    %cst_8 = arith.constant 0.166666672 : f32
    %16 = vector.broadcast %cst_8 : f32 to vector<1x128xf32>
    %17 = arith.mulf %15, %16 : vector<1x128xf32>
    %18 = tpu.concatenate %13, %17 in 1 : vector<1x128xf32>, vector<1x128xf32> -> vector<1x256xf32>
    %19 = tpu.concatenate %10, %18 in 0 : vector<1x256xf32>, vector<1x256xf32> -> vector<2x256xf32>
    %c0_9 = arith.constant 0 : index
    %c0_10 = arith.constant 0 : index
    %20 = vector.load %arg2[%c0_9, %c0_10] : memref<2x256xf32, #tpu.memory_space<vmem>>, vector<2x256xf32>
    %c0_11 = arith.constant 0 : index
    %c0_12 = arith.constant 0 : index
    %21 = vector.load %arg3[%c0_11, %c0_12] : memref<2x256xf32, #tpu.memory_space<vmem>>, vector<2x256xf32>
    %22 = arith.addf %20, %21 : vector<2x256xf32>
    %23 = arith.addf %22, %19 : vector<2x256xf32>
    %24 = arith.truncf %23 : vector<2x256xf32> to vector<2x256xbf16>
    %c0_13 = arith.constant 0 : index
    %c0_14 = arith.constant 0 : index
    %25 = vector.load %arg4[%c0_13, %c0_14] : memref<256x128xf32, #tpu.memory_space<vmem>>, vector<256x128xf32>
    %26 = arith.truncf %25 : vector<256x128xf32> to vector<256x128xbf16>
    %cst_15 = arith.constant dense<0.000000e+00> : vector<2x128xf32>
    %27 = tpu.matmul %24, %26, %cst_15 {dimension_numbers = #tpu.dot_dimension_numbers<[1], [0], [0], [1], [0, 0, 1, 1], [], []>} : vector<2x256xbf16>, vector<256x128xbf16>, vector<2x128xf32> -> vector<2x128xf32>
    %c0_16 = arith.constant 0 : index
    %c0_17 = arith.constant 0 : index
    %28 = vector.load %arg5[%c0_16, %c0_17] : memref<1x128xf32, #tpu.memory_space<vmem>>, vector<1x128xf32>
    %29 = vector.broadcast %28 : vector<1x128xf32> to vector<2x128xf32>
    %30 = arith.addf %27, %29 : vector<2x128xf32>
    %cst_18 = arith.constant 0.000000e+00 : f32
    %31 = vector.broadcast %cst_18 : f32 to vector<2x128xf32>
    %32 = arith.maximumf %30, %31 : vector<2x128xf32>
    %33 = arith.truncf %32 : vector<2x128xf32> to vector<2x128xbf16>
    %c0_19 = arith.constant 0 : index
    %c0_20 = arith.constant 0 : index
    %34 = vector.load %arg6[%c0_19, %c0_20] : memref<128x64xf32, #tpu.memory_space<vmem>>, vector<128x64xf32>
    %35 = arith.truncf %34 : vector<128x64xf32> to vector<128x64xbf16>
    %cst_21 = arith.constant dense<0.000000e+00> : vector<2x64xf32>
    %36 = tpu.matmul %33, %35, %cst_21 {dimension_numbers = #tpu.dot_dimension_numbers<[1], [0], [0], [1], [0, 0, 1, 1], [], []>} : vector<2x128xbf16>, vector<128x64xbf16>, vector<2x64xf32> -> vector<2x64xf32>
    %c0_22 = arith.constant 0 : index
    %c0_23 = arith.constant 0 : index
    %37 = vector.load %arg7[%c0_22, %c0_23] : memref<1x64xf32, #tpu.memory_space<vmem>>, vector<1x64xf32>
    %38 = vector.broadcast %37 : vector<1x64xf32> to vector<2x64xf32>
    %39 = arith.addf %36, %38 : vector<2x64xf32>
    %cst_24 = arith.constant 0.000000e+00 : f32
    %40 = vector.broadcast %cst_24 : f32 to vector<2x64xf32>
    %41 = arith.maximumf %39, %40 : vector<2x64xf32>
    %42 = arith.truncf %41 : vector<2x64xf32> to vector<2x64xbf16>
    %c0_25 = arith.constant 0 : index
    %c0_26 = arith.constant 0 : index
    %43 = vector.load %arg8[%c0_25, %c0_26] : memref<64x6xf32, #tpu.memory_space<vmem>>, vector<64x6xf32>
    %44 = arith.truncf %43 : vector<64x6xf32> to vector<64x6xbf16>
    %cst_27 = arith.constant dense<0.000000e+00> : vector<2x6xf32>
    %45 = tpu.matmul %42, %44, %cst_27 {dimension_numbers = #tpu.dot_dimension_numbers<[1], [0], [0], [1], [0, 0, 1, 1], [], []>} : vector<2x64xbf16>, vector<64x6xbf16>, vector<2x6xf32> -> vector<2x6xf32>
    %c0_28 = arith.constant 0 : index
    %c0_29 = arith.constant 0 : index
    %46 = vector.load %arg9[%c0_28, %c0_29] : memref<1x6xf32, #tpu.memory_space<vmem>>, vector<1x6xf32>
    %47 = vector.broadcast %46 : vector<1x6xf32> to vector<2x6xf32>
    %48 = arith.addf %45, %47 : vector<2x6xf32>
    %cst_30 = arith.constant dense<0xFF800000> : vector<2xf32>
    %49 = vector.multi_reduction <maximumf>, %48, %cst_30 [1] : vector<2x6xf32> to vector<2xf32>
    %50 = vector.shape_cast %49 : vector<2xf32> to vector<2x1xf32>
    %51 = vector.broadcast %50 : vector<2x1xf32> to vector<2x6xf32>
    %52 = arith.subf %48, %51 : vector<2x6xf32>
    %53 = math.exp %52 : vector<2x6xf32>
    %cst_31 = arith.constant dense<0.000000e+00> : vector<2xf32>
    %54 = vector.multi_reduction <add>, %53, %cst_31 [1] : vector<2x6xf32> to vector<2xf32>
    %55 = vector.shape_cast %54 : vector<2xf32> to vector<2x1xf32>
    %56 = math.log %55 : vector<2x1xf32>
    %57 = vector.broadcast %56 : vector<2x1xf32> to vector<2x6xf32>
    %58 = arith.subf %52, %57 : vector<2x6xf32>
    %c0_32 = arith.constant 0 : index
    %c0_33 = arith.constant 0 : index
    %59 = vector.load %arg10[%c0_32, %c0_33] : memref<2x6xf32, #tpu.memory_space<vmem>>, vector<2x6xf32>
    tpu.vector_store %arg10[%c0_32, %c0_33], %58 {strides = array<i32>} : memref<2x6xf32, #tpu.memory_space<vmem>>, vector<2x6xf32>,
    return
  }
}

</mosaic_0001>

<bundles_post_ra>
// kernel: eq.22
= control target key start
LH: loop header
LB: loop body
LE: loop exit
PB: predicated region body
PF: predicated region fallthrough
CT: control target
= control target key end

     0   :  { %vm7_vm0 = vcmask 64512   ;;  %vm13_vm1 = vcmask 130112   ;;  %s39_s0 = inlined_call_operand.vmem [shape: s32[2,8], index: 0, kind: input, shape index: {}]   ;;  %s40_s1 = inlined_call_operand.vmem [shape: s32[16], index: 1, kind: output, shape index: {}]  }
   0x1   :  { %v4_v0 = vld [vmem:[%s39_s0] sm:$0x3]  ;;  %s22_s0 = smov 8  }
   0x2   :  { %5 = vst [vmem:[#allocation1] sm:$0x3] %v4_v0 }
   0x9   :  { %v10_v1 = vld [vmem:[#allocation1 + $0x1] sm:$0x1]   ;;  %v6_v2 = vld [vmem:[#allocation1] sm:$0x1]  }
   0xa   :  { %11 = vrot.lane.b32.xlu0 %v10_v1, %s22_s0  ;;  %8 = vst.msk [vmem:[#allocation0] sm:$0x1] %vm7_vm0, %v6_v2  }
  0x7c   :  { %v12_v3 = vpop.permute.xlu0 %11  }
  0x7d   :  { %14 = vst.msk [vmem:[#allocation0] sm:$0x1] %vm13_vm1, %v12_v3  }
  0x84   :  { %v18_v4 = vld [vmem:[#allocation0] sm:$0x1] }
  0x85   :  { %20 = vst [vmem:[%s40_s1] sm:$0x1] %v18_v4 }

// kernel: eq.29
= control target key start
LH: loop header
LB: loop body
LE: loop exit
PB: predicated region body
PF: predicated region fallthrough
CT: control target
= control target key end

     0   :  { %vm7_vm0 = vcmask 56320   ;;  %vm13_vm1 = vcmask 113720   ;;  %s39_s0 = inlined_call_operand.vmem [shape: s32[2,7], index: 0, kind: input, shape index: {}]   ;;  %s40_s1 = inlined_call_operand.vmem [shape: s32[14], index: 1, kind: output, shape index: {}]  }
   0x1   :  { %v4_v0 = vld [vmem:[%s39_s0] sm:$0x3]  ;;  %s22_s0 = smov 7  }
   0x2   :  { %5 = vst [vmem:[#allocation1] sm:$0x3] %v4_v0 }
   0x9   :  { %v10_v1 = vld [vmem:[#allocation1 + $0x1] sm:$0x1]   ;;  %v6_v2 = vld [vmem:[#allocation1] sm:$0x1]  }
   0xa   :  { %11 = vrot.lane.b32.xlu0 %v10_v1, %s22_s0  ;;  %8 = vst.msk [vmem:[#allocation0] sm:$0x1] %vm7_vm0, %v6_v2  }
  0x7c   :  { %v12_v3 = vpop.permute.xlu0 %11  }
  0x7d   :  { %14 = vst.msk [vmem:[#allocation0] sm:$0x1] %vm13_vm1, %v12_v3  }
  0x84   :  { %v18_v4 = vld [vmem:[#allocation0] sm:$0x1] }
  0x85   :  { %20 = vst [vmem:[%s40_s1] sm:$0x1] %v18_v4 }

// kernel: net_forward.4
= control target key start
LH: loop header
LB: loop body
LE: loop exit
PB: predicated region body
PF: predicated region fallthrough
CT: control target
= control target key end

     0   :  { %vm101_vm0 = vcmask 64512   ;;  %vm36_vm1 = vcmask 162816   ;;  %vm43_vm2 = vcmask 1041408   ;;  %vm107_vm3 = vcmask 1043456   ;;  %s499_s1 = inlined_call_operand.vmem [shape: f32[20,8], index: 1, kind: input, shape index: {}]   ;;  %s500_s0 = inlined_call_operand.vmem [shape: f32[20,20], index: 0, kind: input, shape index: {}]   ;;  %s501_s3 = inlined_call_operand.vmem [shape: f32[8,128], index: 3, kind: input, shape index: {}]   ;;  %s502_s2 = inlined_call_operand.vmem [shape: f32[8,128], index: 2, kind: input, shape index: {}]   ;;  %s503_s4 = inlined_call_operand.vmem [shape: f32[1,128], index: 4, kind: input, shape index: {}]   ;;  %s504_s5 = inlined_call_operand.vmem [shape: f32[1,128], index: 5, kind: input, shape index: {}]   ;;  %s505_s6 = inlined_call_operand.vmem [shape: f32[20,128], index: 6, kind: output, shape index: {0}]   ;;  %s506_s7 = inlined_call_operand.vmem [shape: f32[1,20], index: 7, kind: output, shape index: {1}]  }
   0x1   :  { %v29_v0 = vld [vmem:[%s499_s1] sm:$0xff]  ;;  %v30_v1 = vld [vmem:[%s499_s1 + $0x8] sm:$0xff]  ;;  %v31_v2 = vld [vmem:[%s499_s1 + $0x10] sm:$0xf]  ;;  %v403_v27 = vmov 0.0|0.0   ;;  %vm404_vm4 = vmmov 0   ;;  %v231_v29 = vlaneseq }
   0x2   :  { %v34_v3 = vpack.c.bf16 %v30_v1, %v29_v0  ;;  %v35_v4 = vpack.c.bf16 %v31_v2, %v31_v2  ;;  %v26_v5 = vld [vmem:[%s500_s0] sm:$0xff]  ;;  %v27_v6 = vld [vmem:[%s500_s0 + $0x8] sm:$0xff]  ;;  %v28_v12 = vld [vmem:[%s500_s0 + $0x10] sm:$0xf]  ;;  %v405_v28 = vmov 0.0   ;;  %vm320_vm5 = vcmask 155648  }
   0x3   :  { %v32_v7 = vpack.c.bf16 %v27_v6, %v26_v5  ;;  %v99_v8 = vld [vmem:[%s501_s3] sm:$0xff]  ;;  %v33_v15 = vpack.c.bf16 %v28_v12, %v28_v12  ;;  %v232_v30 = vshrl.u32 %v231_v29, 7 }
   0x4   :  { %v97_v9 = vld [vmem:[%s502_s2] sm:$0xff]  ;;  %357 = vmatprep.subr.bf16.mxu0 %v34_v3  ;;  %v100_v10 = vpack.c.bf16 %v99_v8, %v99_v8  ;;  %367 = vmatprep.mubr.msk.bf16.mxu1 %vm101_vm0, %v34_v3  ;;  %v45_v13 = vsel %vm43_vm2, %v35_v4, 0 }
   0x5   :  { %v98_v11 = vpack.c.bf16 %v97_v9, %v97_v9  ;;  %358 = vmatpush3.bf16.msra.mxu0 %v34_v3  ;;  %361 = vmatprep.mubr.msk.bf16.mxu0 %vm36_vm1, %v32_v7  ;;  %v233_v31 = vsub.s32 0, %v232_v30  ;;  %v342_v33 = vld [vmem:[%s503_s4] ss:$0 sm:$0xff] }
   0x6   :  { %389 = vmatprep.subr.msk.bf16.mxu0 %vm43_vm2, %v35_v4  ;;  %390 = vmatprep.subr.msk.bf16.mxu1 %vm107_vm3, %v100_v10  ;;  %v109_v14 = vsel %vm107_vm3, %v100_v10, 0  ;;  %v229_v34 = vld [vmem:[%s504_s5] sm:$0x1] }
   0x7   :  { %366 = vmatpush3.bf16.msra.mxu1 %v109_v14  ;;  %v166_v16 = vsel %vm107_vm3, %v98_v11, 0  ;;  %v234_v41 = vrot.slane %v229_v34, %v233_v31 }
   0x8   :  { %391 = vmatprep.subr.msk.bf16.mxu1 %vm107_vm3, %v98_v11 }
   0x9   :  { %360 = vmatpush3.bf16.msra.mxu0 %v45_v13 }
   0xa   :  { %368 = vmatmul.mubr.msk.bf16.vlgmr.msra.gmra.mrb[0].mxu1 %vm101_vm0, %v35_v4  ;;  %386 = vmatprep.subr.bf16.mxu0 %v403_v27 }
   0xb   :  { %372 = vmatpush3.bf16.msra.mxu1 %v166_v16 }
   0xc   :  { %362 = vmatmul.mubr.msk.bf16.vlgmr.msra.gmra.mrb[0].mxu0 %vm36_vm1, %v33_v15 }
   0xd   :  { %383 = vmatprep.mubr.msk.f32.mxu0 %vm404_vm4, %v405_v28 }
  0xdd   :  { %v369_v17 = vpop.f32.mrb[0].mxu1 }
  0xde   :  { %v145_v18 = vpop.f32.mrb[1].mxu1 }
  0xdf   :  { %v363_v19 = vpop.f32.mrb[0].mxu0  ;;  %v370_v20 = vpop.f32.mrb[2].mxu1 }
  0xe0   :  { %v81_v21 = vpop.f32.mrb[1].mxu0  ;;  %v148_v22 = vpop.f32.mrb[3].mxu1  ;;  %v96_v26 = vpack.c.bf16 %v363_v19, %v363_v19 }
  0xe1   :  { %v364_v23 = vpop.f32.mrb[2].mxu0 }
  0xe2   :  { %v84_v24 = vpop.f32.mrb[3].mxu0 }
  0xe3   :  { %v95_v25 = vpack.c.bf16 %v84_v24, %v81_v21 }
  0xe5   :  { %373 = vmatprep.mubr.msk.bf16.mxu1 %vm101_vm0, %v95_v25 }
  0xe6   :  { %374 = vmatmul.mubr.msk.bf16.vlgmr.msra.gmra.mrb[4].mxu1 %vm101_vm0, %v96_v26 }
 0x1b9   :  { %v375_v32 = vpop.f32.mrb[4].mxu1 }
 0x1ba   :  { %v211_v35 = vadd.f32 %v375_v32, %v369_v17  ;;  %v202_v36 = vpop.f32.mrb[5].mxu1 }
 0x1bb   :  { %v203_v37 = vadd.f32 %v202_v36, %v145_v18  ;;  %v376_v38 = vpop.f32.mrb[6].mxu1 }
 0x1bc   :  { %v225_v39 = vadd.f32 %v342_v33, %v211_v35  ;;  %v205_v40 = vpop.f32.mrb[7].mxu1 }
 0x1bd   :  { %v223_v42 = vadd.f32 %v342_v33, %v203_v37  ;;  %v206_v43 = vadd.f32 %v205_v40, %v148_v22 }
 0x1be   :  { %v228_v44 = vmax.f32 %v225_v39, 0.0 }
 0x1bf   :  { %v226_v45 = vmax.f32 %v223_v42, 0.0  ;;  %v224_v46 = vadd.f32 %v342_v33, %v206_v43 }
 0x1c0   :  { %v238_v47 = vmul.f32 %v234_v41, %v228_v44 }
 0x1c1   :  { %v227_v48 = vmax.f32 %v224_v46, 0.0  ;;  %v236_v49 = vmul.f32 %v234_v41, %v226_v45 }
 0x1c2   :  { %v243_v50 = vsel %vm107_vm3, %v238_v47, 0.0 }
 0x1c3   :  { %244 = vadd.xlane.f32.xlu1 %v243_v50  ;;  %239 = vadd.xlane.f32.xlu0 %v236_v49  ;;  %v387_v51 = vpack.c.bf16 %v227_v48, %v226_v45  ;;  %v237_v52 = vmul.f32 %v234_v41, %v227_v48 }
 0x1c5   :  { %388 = vmatpush3.bf16.xpose.msra.mxu0 %v387_v51 }
 0x1c6   :  { %381 = vmatprep.subr.mxu0 %v405_v28 }
 0x1c7   :  { %241 = vadd.xlane.f32.xlu0 %v237_v52 }
 0x1cd   :  { %382 = vmatpush3.xpose.msra.mxu0 %v228_v44 }
 0x1d0   :  { %384 = vmatmul.mubr.f32.vlgmr.msra.gmra.mrb[4].mxu0 %v229_v34 }
 0x250   :  { %v245_v53 = vpop.xlane.xlu1 %244  ;;  %v240_v54 = vpop.xlane.xlu0 %239 }
 0x251   :  { %395 = vtanh.f32 %v245_v53 }
 0x252   :  { %397 = vtanh.f32 %v240_v54 }
 0x254   :  { %v242_v55 = vpop.xlane.xlu0 %241 }
 0x255   :  { %399 = vtanh.f32 %v242_v55 }
 0x25b   :  { %v396_v56 = vpop.eup %395 }
 0x25c   :  { %v398_v57 = vpop.eup %397  ;;  %v324_v58 = vmul.f32 %v396_v56, %v228_v44 }
 0x25d   :  { %v322_v59 = vmul.f32 %v398_v57, %v226_v45 }
 0x25e   :  { %327 = vst [vmem:[%s505_s6 + $0x10] sm:$0xf] %v324_v58 }
 0x25f   :  { %v400_v60 = vpop.eup %399  ;;  %325 = vst [vmem:[%s505_s6] sm:$0xff] %v322_v59 }
 0x260   :  { %v323_v61 = vmul.f32 %v400_v60, %v227_v48 }
 0x262   :  { %326 = vst [vmem:[%s505_s6 + $0x8] sm:$0xff] %v323_v61 }
 0x2a3   :  { %v315_v62 = vpop.f32.mrb[4].mxu0 }
 0x2a4   :  { %401 = vtanh.f32 %v315_v62  ;;  %v385_v63 = vpop.f32.mrb[5].mxu0 }
 0x2ae   :  { %v402_v0 = vpop.eup %401 }
 0x2af   :  { %321 = vst.msk [vmem:[%s506_s7] sm:$0x1] %vm320_vm5, %v402_v0 }

// kernel: net_forward.5
= control target key start
LH: loop header
LB: loop body
LE: loop exit
PB: predicated region body
PF: predicated region fallthrough
CT: control target
= control target key end

     0   :  { %v714_v0 = vmov 0.0   ;;  %vm715_vm0 = vmmov 0   ;;  %vm134_vm1 = vcmask 1041408   ;;  %vm42_vm2 = vcmask 162816   ;;  %s973_s3 = inlined_call_operand.vmem [shape: f32[20,20], index: 3, kind: input, shape index: {}]   ;;  %s974_s0 = inlined_call_operand.vmem [shape: f32[16,20], index: 0, kind: input, shape index: {}]   ;;  %s975_s2 = inlined_call_operand.vmem [shape: f32[20,128], index: 2, kind: input, shape index: {}]   ;;  %s976_s1 = inlined_call_operand.vmem [shape: f32[20,16], index: 1, kind: input, shape index: {}]   ;;  %s977_s5 = inlined_call_operand.vmem [shape: f32[128,128], index: 5, kind: input, shape index: {}]   ;;  %s978_s8 = inlined_call_operand.vmem [shape: f32[2,256], index: 8, kind: output, shape index: {0}]   ;;  %s979_s4 = inlined_call_operand.vmem [shape: f32[128,128], index: 4, kind: input, shape index: {}]   ;;  %s980_s10 = inlined_call_operand.vmem [shape: f32[16,16], index: 10, kind: output, shape index: {2}]   ;;  %s981_s6 = inlined_call_operand.vmem [shape: f32[1,128], index: 6, kind: input, shape index: {}]   ;;  %s982_s7 = inlined_call_operand.vmem [shape: f32[1,128], index: 7, kind: input, shape index: {}]   ;;  %s983_s9 = inlined_call_operand.vmem [shape: f32[16,128], index: 9, kind: output, shape index: {1}]   ;;  %s984_s11 = inlined_call_operand.vmem [shape: f32[1,16], index: 11, kind: output, shape index: {3}]  }
   0x1   :  { %629 = vmatprep.subr.bf16.mxu1 %v714_v0  ;;  %v39_v1 = vld [vmem:[%s973_s3] sm:$0xff]  ;;  %v40_v2 = vld [vmem:[%s973_s3 + $0x8] sm:$0xff]  ;;  %v41_v3 = vld [vmem:[%s973_s3 + $0x10] sm:$0xf]  ;;  %633 = vmatprep.mubr.msk.bf16.mxu1 %vm715_vm0, %v714_v0  ;;  %vm49_vm3 = vcmask 1043456   ;;  %vm267_vm4 = vcmask 1040384  }
   0x2   :  { %v129_v4 = vpack.c.bf16 %v40_v2, %v39_v1  ;;  %v130_v5 = vpack.c.bf16 %v41_v3, %v41_v3  ;;  %v34_v6 = vld [vmem:[%s974_s0] sm:$0xff]  ;;  %v37_v8 = vld [vmem:[%s975_s2 + $0x8] sm:$0xff]  ;;  %v38_v12 = vld [vmem:[%s975_s2 + $0x10] sm:$0xf]  ;;  %vm232_vm5 = vcmask 130048   ;;  %vm556_vm6 = vcmask 122880  }
   0x3   :  { %v36_v7 = vld [vmem:[%s975_s2] sm:$0xff]  ;;  %626 = vmatprep.mubr.msk.f32.mxu0 %vm42_vm2, %v34_v6  ;;  %v35_v9 = vld [vmem:[%s974_s0 + $0x8] sm:$0xff]  ;;  %v182_v17 = vld [vmem:[%s976_s1 + $0x10] sm:$0xf] }
   0x4   :  { %630 = vmatpush3.bf16.msra.mxu1 %v129_v4  ;;  %v698_v10 = vpack.c.bf16 %v37_v8, %v36_v7  ;;  %v136_v11 = vsel %vm134_vm1, %v130_v5, 0  ;;  %v180_v13 = vld [vmem:[%s976_s1] sm:$0xff]  ;;  %v181_v14 = vld [vmem:[%s976_s1 + $0x8] sm:$0xff]  ;;  %v128_v15 = vpack.c.bf16 %v35_v9, %v34_v6  ;;  %v184_v18 = vpack.c.bf16 %v182_v17, %v182_v17  ;;  %v355_v31 = vld [vmem:[%s977_s5 + $0x10] sm:$0xff] }
   0x5   :  { %631 = vmatprep.subr.bf16.mxu1 %v714_v0  ;;  %v183_v16 = vpack.c.bf16 %v181_v14, %v180_v13  ;;  %v353_v20 = vld [vmem:[%s977_s5] sm:$0xff]  ;;  %v354_v21 = vld [vmem:[%s977_s5 + $0x8] sm:$0xff]  ;;  %v356_v32 = vld [vmem:[%s977_s5 + $0x18] sm:$0xff] }
   0x6   :  { %699 = vmatprep.subr.bf16.mxu0 %v698_v10  ;;  %v189_v19 = vsel %vm134_vm1, %v184_v18, 0  ;;  %v369_v26 = vpack.c.bf16 %v354_v21, %v353_v20  ;;  %v370_v39 = vpack.c.bf16 %v356_v32, %v355_v31  ;;  %v357_v42 = vld [vmem:[%s977_s5 + $0x20] sm:$0xff]  ;;  %v358_v43 = vld [vmem:[%s977_s5 + $0x28] sm:$0xff]  ;;  %v359_v53 = vld [vmem:[%s977_s5 + $0x30] sm:$0xff] }
   0x7   :  { %701 = vmatpush3.bf16.msra.mxu0 %v698_v10  ;;  %v371_v50 = vpack.c.bf16 %v358_v43, %v357_v42  ;;  %v360_v54 = vld [vmem:[%s977_s5 + $0x38] sm:$0xff]  ;;  %v361_v1 = vld [vmem:[%s977_s5 + $0x40] sm:$0xff]  ;;  %v362_v2 = vld [vmem:[%s977_s5 + $0x48] sm:$0xff] }
   0x8   :  { %632 = vmatpush3.bf16.msra.mxu1 %v136_v11  ;;  %624 = vmatprep.subr.msk.mxu0 %vm49_vm3, %v38_v12  ;;  %v372_v61 = vpack.c.bf16 %v360_v54, %v359_v53  ;;  %v373_v6 = vpack.c.bf16 %v362_v2, %v361_v1  ;;  %v363_v8 = vld [vmem:[%s977_s5 + $0x50] sm:$0xff]  ;;  %v366_v13 = vld [vmem:[%s977_s5 + $0x68] sm:$0xff]  ;;  %v329_v18 = vld [vmem:[%s979_s4] sm:$0xff] }
   0x9   :  { %645 = vmatprep.subr.bf16.mxu1 %v714_v0  ;;  %v335_v32 = vld [vmem:[%s979_s4 + $0x30] sm:$0xff]  ;;  %v342_v42 = vld [vmem:[%s979_s4 + $0x68] sm:$0xff] }
   0xb   :  { %634 = vmatmul.mubr.msk.bf16.vlgmr.msra.gmra.mrb[0].mxu1 %vm42_vm2, %v128_v15  ;;  %625 = vmatpush3.msk.msra.mxu0 %vm49_vm3, %v38_v12  ;;  %v365_v12 = vld [vmem:[%s977_s5 + $0x60] sm:$0xff]  ;;  %v367_v15 = vld [vmem:[%s977_s5 + $0x70] sm:$0xff] }
   0xc   :  { %627 = vmatmul.mubr.msk.f32.vlgmr.msra.gmra.mrb[0].mxu0 %vm42_vm2, %v35_v9  ;;  %637 = vmatprep.subr.bf16.mxu0 %v714_v0  ;;  %v364_v9 = vld [vmem:[%s977_s5 + $0x58] sm:$0xff]  ;;  %v375_v14 = vpack.c.bf16 %v366_v13, %v365_v12 }
   0xd   :  { %638 = vmatpush3.bf16.msra.mxu0 %v183_v16  ;;  %641 = vmatprep.mubr.msk.bf16.mxu0 %vm715_vm0, %v714_v0  ;;  %v374_v11 = vpack.c.bf16 %v364_v9, %v363_v8  ;;  %v368_v16 = vld [vmem:[%s977_s5 + $0x78] sm:$0xff] }
   0xe   :  { %639 = vmatprep.subr.bf16.mxu0 %v714_v0  ;;  %647 = vmatprep.mubr.msk.bf16.mxu1 %vm715_vm0, %v714_v0  ;;  %v376_v17 = vpack.c.bf16 %v368_v16, %v367_v15 }
  0x11   :  { %640 = vmatpush3.bf16.msra.mxu0 %v189_v19  ;;  %v330_v19 = vld [vmem:[%s979_s4 + $0x8] sm:$0xff] }
  0x12   :  { %651 = vmatprep.subr.bf16.mxu0 %v714_v0 }
  0xde   :  { %v172_v22 = vpop.f32.mrb[0].mxu1 }
  0xdf   :  { %v635_v23 = vpop.f32.mrb[1].mxu1  ;;  %v628_v24 = vpop.f32.mrb[0].mxu0 }
  0xe0   :  { %v175_v25 = vpop.f32.mrb[2].mxu1  ;;  %v248_v27 = vrot.slane %v628_v24, 4  ;;  %v119_v28 = vpop.f32.mrb[1].mxu0  ;;  %v345_v23 = vpack.c.bf16 %v330_v19, %v329_v18 }
  0xe1   :  { %v179_v29 = vpack.c.bf16 %v175_v25, %v172_v22  ;;  %v636_v30 = vpop.f32.mrb[3].mxu1  ;;  %v235_v33 = vrot.slane %v119_v28, 4  ;;  %v839_v34 = vpack.c.bf16 %v628_v24, %v119_v28 }
  0xe2   :  { %v249_v35 = vmax.f32 %v628_v24, %v248_v27  ;;  %v255_v36 = vadd.f32 %v628_v24, %v248_v27  ;;  %v332_v27 = vld [vmem:[%s979_s4 + $0x18] sm:$0xff]  ;;  %v334_v30 = vld [vmem:[%s979_s4 + $0x28] sm:$0xff] }
  0xe3   :  { %642 = vmatmul.mubr.msk.bf16.vlgmr.msra.gmra.mrb[4].mxu0 %vm42_vm2, %v179_v29  ;;  %v236_v37 = vmax.f32 %v119_v28, %v235_v33  ;;  %v242_v38 = vadd.f32 %v235_v33, %v119_v28  ;;  %646 = vmatpush3.bf16.msra.mxu1 %v839_v34  ;;  %v333_v29 = vld [vmem:[%s979_s4 + $0x20] sm:$0xff]  ;;  %v336_v33 = vld [vmem:[%s979_s4 + $0x38] sm:$0xff] }
  0xe4   :  { %652 = vmatpush3.bf16.msra.mxu0 %v369_v26  ;;  %v250_v40 = vrot.slane %v249_v35, 2  ;;  %v256_v41 = vrot.slane %v255_v36, 2  ;;  %667 = vmatprep.mubr.msk.bf16.mxu0 %vm715_vm0, %v714_v0  ;;  %v331_v26 = vld [vmem:[%s979_s4 + $0x10] sm:$0xff]  ;;  %v347_v31 = vpack.c.bf16 %v334_v30, %v333_v29 }
  0xe5   :  { %653 = vmatprep.subr.bf16.mxu0 %v714_v0  ;;  %v237_v44 = vrot.slane %v236_v37, 2  ;;  %v243_v45 = vrot.slane %v242_v38, 2  ;;  %671 = vmatprep.subr.bf16.mxu1 %v714_v0  ;;  %v346_v28 = vpack.c.bf16 %v332_v27, %v331_v26 }
  0xe6   :  { %v251_v46 = vmax.f32 %v249_v35, %v250_v40  ;;  %v257_v47 = vadd.f32 %v256_v41, %v255_v36  ;;  %v337_v35 = vld [vmem:[%s979_s4 + $0x40] sm:$0xff]  ;;  %v338_v36 = vld [vmem:[%s979_s4 + $0x48] sm:$0xff] }
  0xe7   :  { %v238_v48 = vmax.f32 %v236_v37, %v237_v44  ;;  %v244_v49 = vadd.f32 %v243_v45, %v242_v38  ;;  %v349_v37 = vpack.c.bf16 %v338_v36, %v337_v35  ;;  %v339_v38 = vld [vmem:[%s979_s4 + $0x50] sm:$0xff]  ;;  %v341_v41 = vld [vmem:[%s979_s4 + $0x60] sm:$0xff] }
  0xe8   :  { %654 = vmatpush3.bf16.msra.mxu0 %v370_v39  ;;  %v252_v51 = vrot.slane %v251_v46, 1  ;;  %v258_v52 = vrot.slane %v257_v47, 1  ;;  %v340_v39 = vld [vmem:[%s979_s4 + $0x58] sm:$0xff]  ;;  %v351_v43 = vpack.c.bf16 %v342_v42, %v341_v41 }
  0xe9   :  { %655 = vmatprep.subr.bf16.mxu0 %v714_v0  ;;  %v239_v55 = vrot.slane %v238_v48, 1  ;;  %v245_v56 = vrot.slane %v244_v49, 1  ;;  %v350_v40 = vpack.c.bf16 %v340_v39, %v339_v38 }
  0xea   :  { %v253_v57 = vmax.f32 %v251_v46, %v252_v51  ;;  %v259_v58 = vadd.f32 %v258_v52, %v257_v47 }
  0xeb   :  { %v240_v59 = vmax.f32 %v238_v48, %v239_v55  ;;  %v246_v60 = vadd.f32 %v245_v56, %v244_v49  ;;  %v343_v48 = vld [vmem:[%s979_s4 + $0x70] sm:$0xff]  ;;  %v344_v49 = vld [vmem:[%s979_s4 + $0x78] sm:$0xff]  ;;  %v472_v56 = vlaneseq }
  0xec   :  { %656 = vmatpush3.bf16.msra.mxu0 %v371_v50  ;;  %v260_v62 = vmul.f32 0.125, %v259_v58  ;;  %v263_v63 = vrot.slane %v253_v57, 7  ;;  %v352_v50 = vpack.c.bf16 %v344_v49, %v343_v48 }
  0xed   :  { %657 = vmatprep.subr.bf16.mxu0 %v714_v0  ;;  %v247_v3 = vmul.f32 0.125, %v246_v60  ;;  %v473_v57 = vshrl.u32 %v472_v56, 7  ;;  %v585_v60 = vld [vmem:[%s981_s6] ss:$0 sm:$0xff] }
  0xee   :  { %v264_v4 = vrot.slane %v260_v62, 7  ;;  %v268_v5 = vsel %vm267_vm4, %v240_v59, %v263_v63 }
  0xef   :  { %v474_v58 = vsub.s32 0, %v473_v57 }
  0xf0   :  { %658 = vmatpush3.bf16.msra.mxu0 %v372_v61  ;;  %v269_v7 = vsel %vm267_vm4, %v247_v3, %v264_v4  ;;  %v470_v61 = vld [vmem:[%s982_s7] sm:$0x1] }
  0xf1   :  { %659 = vmatprep.subr.bf16.mxu0 %v714_v0  ;;  %v272_v10 = vcombine.low %v268_v5, %v269_v7  ;;  %v475_v5 = vrot.slane %v470_v61, %v474_v58 }
  0xf3   :  { %583 = vst.sshfl [vmem:[%s978_s8] sm:$0x33 pattern:$0x76325410] %v272_v10 }
  0xf4   :  { %660 = vmatpush3.bf16.msra.mxu0 %v373_v6 }
  0xf5   :  { %661 = vmatprep.subr.bf16.mxu0 %v714_v0 }
  0xf8   :  { %662 = vmatpush3.bf16.msra.mxu0 %v374_v11 }
  0xf9   :  { %663 = vmatprep.subr.bf16.mxu0 %v714_v0 }
  0xfc   :  { %664 = vmatpush3.bf16.msra.mxu0 %v375_v14 }
  0xfd   :  { %665 = vmatprep.subr.bf16.mxu0 %v714_v0 }
 0x100   :  { %666 = vmatpush3.bf16.msra.mxu0 %v376_v17 }
 0x103   :  { %668 = vmatmul.mubr.bf16.vlgmr.msra.gmra.mrb[8].mxu0 %v839_v34  ;;  %v348_v34 = vpack.c.bf16 %v336_v33, %v335_v32 }
 0x104   :  { %695 = vmatprep.mubr.msk.f32.mxu0 %vm715_vm0, %v714_v0 }
 0x1b6   :  { %v225_v20 = vpop.f32.mrb[4].mxu0 }
 0x1b7   :  { %233 = vst.msk [vmem:[%s980_s10] sm:$0xff] %vm232_vm5, %v225_v20  ;;  %v643_v21 = vpop.f32.mrb[5].mxu0 }
 0x1b8   :  { %v228_v22 = vpop.f32.mrb[6].mxu0 }
 0x1b9   :  { %234 = vst.msk [vmem:[%s980_s10 + $0x8] sm:$0xff] %vm232_vm5, %v228_v22  ;;  %v282_v24 = vpack.c.bf16 %v228_v22, %v225_v20  ;;  %v644_v25 = vpop.f32.mrb[7].mxu0 }
 0x1bb   :  { %648 = vmatmul.mubr.msk.bf16.vlgmr.msra.gmra.mrb[4].mxu1 %vm232_vm5, %v282_v24 }
 0x1bc   :  { %672 = vmatpush3.bf16.msra.mxu1 %v345_v23  ;;  %687 = vmatprep.mubr.msk.bf16.mxu1 %vm715_vm0, %v714_v0 }
 0x1bd   :  { %673 = vmatprep.subr.bf16.mxu1 %v714_v0 }
 0x1c0   :  { %674 = vmatpush3.bf16.msra.mxu1 %v346_v28 }
 0x1c1   :  { %675 = vmatprep.subr.bf16.mxu1 %v714_v0 }
 0x1c4   :  { %676 = vmatpush3.bf16.msra.mxu1 %v347_v31 }
 0x1c5   :  { %677 = vmatprep.subr.bf16.mxu1 %v714_v0 }
 0x1c8   :  { %678 = vmatpush3.bf16.msra.mxu1 %v348_v34 }
 0x1c9   :  { %679 = vmatprep.subr.bf16.mxu1 %v714_v0 }
 0x1cc   :  { %680 = vmatpush3.bf16.msra.mxu1 %v349_v37 }
 0x1cd   :  { %681 = vmatprep.subr.bf16.mxu1 %v714_v0 }
 0x1d0   :  { %682 = vmatpush3.bf16.msra.mxu1 %v350_v40 }
 0x1d1   :  { %683 = vmatprep.subr.bf16.mxu1 %v714_v0 }
 0x1d4   :  { %684 = vmatpush3.bf16.msra.mxu1 %v351_v43 }
 0x1d5   :  { %685 = vmatprep.subr.bf16.mxu1 %v714_v0  ;;  %v716_v0 = vmov 0.0|0.0  }
 0x1d6   :  { %v411_v44 = vpop.f32.mrb[8].mxu0  ;;  %702 = vmatprep.subr.bf16.mxu0 %v716_v0 }
 0x1d7   :  { %v669_v45 = vpop.f32.mrb[9].mxu0 }
 0x1d8   :  { %v414_v46 = vpop.f32.mrb[10].mxu0  ;;  %686 = vmatpush3.bf16.msra.mxu1 %v352_v50 }
 0x1d9   :  { %v670_v47 = vpop.f32.mrb[11].mxu0 }
 0x28e   :  { %v321_v51 = vpop.f32.mrb[4].mxu1 }
 0x28f   :  { %v649_v52 = vpop.f32.mrb[5].mxu1 }
 0x290   :  { %v324_v53 = vpop.f32.mrb[6].mxu1 }
 0x291   :  { %v328_v54 = vpack.c.bf16 %v324_v53, %v321_v51  ;;  %v650_v55 = vpop.f32.mrb[7].mxu1 }
 0x293   :  { %688 = vmatmul.mubr.bf16.vlgmr.msra.gmra.mrb[8].mxu1 %v328_v54 }
 0x366   :  { %v452_v59 = vpop.f32.mrb[8].mxu1 }
 0x367   :  { %v453_v62 = vadd.f32 %v452_v59, %v411_v44  ;;  %v689_v63 = vpop.f32.mrb[9].mxu1 }
 0x368   :  { %v455_v1 = vpop.f32.mrb[10].mxu1 }
 0x369   :  { %v466_v2 = vadd.f32 %v585_v60, %v453_v62  ;;  %v456_v3 = vadd.f32 %v455_v1, %v414_v46  ;;  %v690_v4 = vpop.f32.mrb[11].mxu1 }
 0x36b   :  { %v468_v6 = vmax.f32 %v466_v2, 0.0  ;;  %v467_v7 = vadd.f32 %v585_v60, %v456_v3 }
 0x36d   :  { %v469_v8 = vmax.f32 %v467_v7, 0.0  ;;  %v477_v9 = vmul.f32 %v475_v5, %v468_v6 }
 0x36f   :  { %479 = vadd.xlane.f32.xlu0 %v477_v9  ;;  %v703_v10 = vpack.c.bf16 %v469_v8, %v468_v6  ;;  %v478_v11 = vmul.f32 %v475_v5, %v469_v8 }
 0x371   :  { %704 = vmatpush3.bf16.xpose.msra.mxu0 %v703_v10 }
 0x373   :  { %481 = vadd.xlane.f32.xlu0 %v478_v11 }
 0x378   :  { %696 = vmatmul.mubr.f32.vlgmr.msra.gmra.mrb[2].mxu0 %v470_v61 }
 0x3fc   :  { %v480_v12 = vpop.xlane.xlu0 %479 }
 0x3fd   :  { %708 = vtanh.f32 %v480_v12 }
 0x400   :  { %v482_v13 = vpop.xlane.xlu0 %481 }
 0x401   :  { %710 = vtanh.f32 %v482_v13 }
 0x407   :  { %v709_v14 = vpop.eup %708 }
 0x408   :  { %v558_v15 = vmul.f32 %v709_v14, %v468_v6 }
 0x40a   :  { %560 = vst [vmem:[%s983_s9] sm:$0xff] %v558_v15 }
 0x40b   :  { %v711_v16 = vpop.eup %710 }
 0x40c   :  { %v559_v17 = vmul.f32 %v711_v16, %v469_v8 }
 0x40e   :  { %561 = vst [vmem:[%s983_s9 + $0x8] sm:$0xff] %v559_v17 }
 0x44b   :  { %v551_v18 = vpop.f32.mrb[2].mxu0 }
 0x44c   :  { %712 = vtanh.f32 %v551_v18  ;;  %v697_v19 = vpop.f32.mrb[3].mxu0 }
 0x456   :  { %v713_v20 = vpop.eup %712 }
 0x457   :  { %557 = vst.msk [vmem:[%s984_s11] sm:$0x1] %vm556_vm6, %v713_v20 }

// kernel: eq.36
= control target key start
LH: loop header
LB: loop body
LE: loop exit
PB: predicated region body
PF: predicated region fallthrough
CT: control target
= control target key end

     0   :  { %vm7_vm0 = vcmask 48128   ;;  %vm13_vm1 = vcmask 97328   ;;  %s39_s0 = inlined_call_operand.vmem [shape: s32[2,6], index: 0, kind: input, shape index: {}]   ;;  %s40_s1 = inlined_call_operand.vmem [shape: s32[12], index: 1, kind: output, shape index: {}]  }
   0x1   :  { %v4_v0 = vld [vmem:[%s39_s0] sm:$0x3]  ;;  %s22_s0 = smov 6  }
   0x2   :  { %5 = vst [vmem:[#allocation1] sm:$0x3] %v4_v0 }
   0x9   :  { %v10_v1 = vld [vmem:[#allocation1 + $0x1] sm:$0x1]   ;;  %v6_v2 = vld [vmem:[#allocation1] sm:$0x1]  }
   0xa   :  { %11 = vrot.lane.b32.xlu0 %v10_v1, %s22_s0  ;;  %8 = vst.msk [vmem:[#allocation0] sm:$0x1] %vm7_vm0, %v6_v2  }
  0x7c   :  { %v12_v3 = vpop.permute.xlu0 %11  }
  0x7d   :  { %14 = vst.msk [vmem:[#allocation0] sm:$0x1] %vm13_vm1, %v12_v3  }
  0x84   :  { %v18_v4 = vld [vmem:[#allocation0] sm:$0x1] }
  0x85   :  { %20 = vst [vmem:[%s40_s1] sm:$0x1] %v18_v4 }

// kernel: net_forward.6
= control target key start
LH: loop header
LB: loop body
LE: loop exit
PB: predicated region body
PF: predicated region fallthrough
CT: control target
= control target key end

     0   :  { %v748_v3 = vmov 0.0   ;;  %vm749_vm0 = vmmov 0   ;;  %vm41_vm1 = vcmask 130048   ;;  %s1009_s0 = inlined_call_operand.vmem [shape: f32[14,16], index: 0, kind: input, shape index: {}]   ;;  %s1010_s1 = inlined_call_operand.vmem [shape: f32[16,14], index: 1, kind: input, shape index: {}]   ;;  %s1011_s2 = inlined_call_operand.vmem [shape: f32[16,128], index: 2, kind: input, shape index: {}]   ;;  %s1012_s3 = inlined_call_operand.vmem [shape: f32[16,16], index: 3, kind: input, shape index: {}]   ;;  %s1013_s4 = inlined_call_operand.vmem [shape: f32[128,128], index: 4, kind: input, shape index: {}]   ;;  %s1014_s5 = inlined_call_operand.vmem [shape: f32[128,128], index: 5, kind: input, shape index: {}]   ;;  %s1015_s6 = inlined_call_operand.vmem [shape: f32[1,128], index: 6, kind: input, shape index: {}]   ;;  %s1016_s7 = inlined_call_operand.vmem [shape: f32[1,128], index: 7, kind: input, shape index: {}]   ;;  %s1017_s8 = inlined_call_operand.vmem [shape: f32[2,256], index: 8, kind: output, shape index: {0}]   ;;  %s1018_s9 = inlined_call_operand.vmem [shape: f32[14,128], index: 9, kind: output, shape index: {1}]   ;;  %s1019_s10 = inlined_call_operand.hbm [shape: f32[14,14], index: 10, kind: output, shape index: {2}]   ;;  %s1020_s11 = inlined_call_operand.vmem [shape: f32[1,14], index: 11, kind: output, shape index: {3}]  }
   0x1   :  { %v39_v0 = vld [vmem:[%s1012_s3] sm:$0xff]  ;;  %v40_v1 = vld [vmem:[%s1012_s3 + $0x8] sm:$0xff]  ;;  %640 = vmatprep.subr.bf16.mxu1 %v748_v3  ;;  %642 = vmatprep.mubr.msk.bf16.mxu1 %vm749_vm0, %v748_v3 }
   0x2   :  { %v35_v2 = vld [vmem:[%s1009_s0] sm:$0xff]  ;;  %v124_v4 = vpack.c.bf16 %v40_v1, %v39_v0  ;;  %v36_v5 = vld [vmem:[%s1009_s0 + $0x8] sm:$0x3f] }
   0x3   :  { %v37_v6 = vld [vmem:[%s1011_s2] sm:$0xff]  ;;  %v38_v7 = vld [vmem:[%s1011_s2 + $0x8] sm:$0xff]  ;;  %v123_v8 = vpack.c.bf16 %v36_v5, %v35_v2  ;;  %637 = vmatprep.mubr.msk.f32.mxu0 %vm41_vm1, %v35_v2 }
   0x4   :  { %v705_v9 = vpack.c.bf16 %v38_v7, %v37_v6 }
   0x5   :  { %17 = vsyncpa [#allocation3], 0  ;;  %641 = vmatpush3.bf16.msra.mxu1 %v124_v4  ;;  %v170_v10 = vld [vmem:[%s1010_s1] sm:$0xff]  ;;  %v171_v11 = vld [vmem:[%s1010_s1 + $0x8] sm:$0xff]  ;;  %vm221_vm2 = vcmask 1046528   ;;  %vm250_vm3 = vcmask 1040384  }
   0x6   :  { %706 = vmatprep.subr.bf16.mxu0 %v705_v9  ;;  %652 = vmatprep.subr.bf16.mxu1 %v748_v3  ;;  %v172_v12 = vpack.c.bf16 %v171_v11, %v170_v10  ;;  %v357_v13 = vld [vmem:[%s1014_s5] sm:$0xff]  ;;  %v358_v14 = vld [vmem:[%s1014_s5 + $0x8] sm:$0xff]  ;;  %v359_v19 = vld [vmem:[%s1014_s5 + $0x10] sm:$0xff]  ;;  %vm237_vm4 = vcmask 1047559   ;;  %vm239_vm5 = vcmask 1045504   ;;  %vm217_vm6 = vcmask 113664  }
   0x7   :  { %708 = vmatpush3.bf16.msra.mxu0 %v705_v9  ;;  %v373_v18 = vpack.c.bf16 %v358_v14, %v357_v13  ;;  %v360_v23 = vld [vmem:[%s1014_s5 + $0x18] sm:$0xff]  ;;  %v361_v33 = vld [vmem:[%s1014_s5 + $0x20] sm:$0xff]  ;;  %v362_v34 = vld [vmem:[%s1014_s5 + $0x28] sm:$0xff]  ;;  %vm219_vm7 = vcmask 111616  }
   0x8   :  { %643 = vmatmul.mubr.msk.bf16.vlgmr.msra.gmra.mrb[0].mxu1 %vm41_vm1, %v123_v8  ;;  %646 = vmatprep.subr.bf16.mxu0 %v748_v3  ;;  %v374_v30 = vpack.c.bf16 %v360_v23, %v359_v19  ;;  %v375_v36 = vpack.c.bf16 %v362_v34, %v361_v33  ;;  %v363_v37 = vld [vmem:[%s1014_s5 + $0x30] sm:$0xff]  ;;  %v364_v38 = vld [vmem:[%s1014_s5 + $0x38] sm:$0xff]  ;;  %v365_v40 = vld [vmem:[%s1014_s5 + $0x40] sm:$0xff] }
   0x9   :  { %654 = vmatprep.mubr.msk.bf16.mxu1 %vm749_vm0, %v748_v3  ;;  %v376_v39 = vpack.c.bf16 %v364_v38, %v363_v37  ;;  %v366_v41 = vld [vmem:[%s1014_s5 + $0x48] sm:$0xff]  ;;  %v367_v43 = vld [vmem:[%s1014_s5 + $0x50] sm:$0xff]  ;;  %v368_v44 = vld [vmem:[%s1014_s5 + $0x58] sm:$0xff] }
   0xa   :  { %638 = vmatmul.mubr.msk.f32.vlgmr.msra.gmra.mrb[0].mxu0 %vm41_vm1, %v36_v5  ;;  %v377_v42 = vpack.c.bf16 %v366_v41, %v365_v40  ;;  %v378_v45 = vpack.c.bf16 %v368_v44, %v367_v43  ;;  %v369_v46 = vld [vmem:[%s1014_s5 + $0x60] sm:$0xff]  ;;  %v370_v47 = vld [vmem:[%s1014_s5 + $0x68] sm:$0xff]  ;;  %v371_v49 = vld [vmem:[%s1014_s5 + $0x70] sm:$0xff] }
   0xb   :  { %648 = vmatprep.mubr.msk.bf16.mxu0 %vm749_vm0, %v748_v3  ;;  %647 = vmatpush3.bf16.msra.mxu0 %v172_v12  ;;  %v379_v48 = vpack.c.bf16 %v370_v47, %v369_v46  ;;  %v372_v50 = vld [vmem:[%s1014_s5 + $0x78] sm:$0xff]  ;;  %v333_v23 = vld [vmem:[%s1013_s4] sm:$0xff]  ;;  %v339_v37 = vld [vmem:[%s1013_s4 + $0x30] sm:$0xff] }
   0xc   :  { %658 = vmatprep.subr.bf16.mxu0 %v748_v3  ;;  %v380_v51 = vpack.c.bf16 %v372_v50, %v371_v49  ;;  %v337_v34 = vld [vmem:[%s1013_s4 + $0x20] sm:$0xff]  ;;  %v340_v38 = vld [vmem:[%s1013_s4 + $0x38] sm:$0xff]  ;;  %v342_v41 = vld [vmem:[%s1013_s4 + $0x48] sm:$0xff] }
   0xd   :  { %v341_v40 = vld [vmem:[%s1013_s4 + $0x40] sm:$0xff]  ;;  %v343_v43 = vld [vmem:[%s1013_s4 + $0x50] sm:$0xff]  ;;  %v344_v44 = vld [vmem:[%s1013_s4 + $0x58] sm:$0xff] }
   0xe   :  { %v345_v46 = vld [vmem:[%s1013_s4 + $0x60] sm:$0xff]  ;;  %v346_v47 = vld [vmem:[%s1013_s4 + $0x68] sm:$0xff] }
  0xdb   :  { %v162_v15 = vpop.f32.mrb[0].mxu1 }
  0xdc   :  { %v644_v16 = vpop.f32.mrb[1].mxu1 }
  0xdd   :  { %v165_v17 = vpop.f32.mrb[2].mxu1  ;;  %v860_v20 = vpop.f32.mrb[0].mxu0 }
  0xde   :  { %v169_v21 = vpack.c.bf16 %v165_v17, %v162_v15  ;;  %v645_v22 = vpop.f32.mrb[3].mxu1  ;;  %v252_v24 = vrot.slane %v860_v20, 7  ;;  %v114_v25 = vpop.f32.mrb[1].mxu0  ;;  %v240_v62 = vsel %vm239_vm5, %v860_v20, -inf }
  0xdf   :  { %v251_v26 = vrot.slane %v114_v25, 7  ;;  %v284_v27 = vpack.c.bf16 %v860_v20, %v114_v25  ;;  %v222_v28 = vsel %vm221_vm2, %v114_v25, -inf  ;;  %v229_v29 = vsel %vm221_vm2, %v114_v25, 0.0 }
  0xe0   :  { %649 = vmatmul.mubr.msk.bf16.vlgmr.msra.gmra.mrb[4].mxu0 %vm41_vm1, %v169_v21  ;;  %v230_v53 = vrot.slane %v229_v29, 4  ;;  %v223_v55 = vrot.slane %v222_v28, 4  ;;  %v238_v61 = vsel %vm237_vm4, %v114_v25, -inf }
  0xe1   :  { %659 = vmatpush3.bf16.msra.mxu0 %v373_v18  ;;  %674 = vmatprep.mubr.msk.bf16.mxu0 %vm749_vm0, %v748_v3  ;;  %v253_v31 = vsel %vm250_vm3, %v251_v26, %v252_v24  ;;  %v289_v32 = vsel %vm221_vm2, %v284_v27, 0  ;;  %v241_v2 = vmax.f32 %v238_v61, %v240_v62  ;;  %v334_v24 = vld [vmem:[%s1013_s4 + $0x8] sm:$0xff]  ;;  %v476_v61 = vlaneseq }
  0xe2   :  { %660 = vmatprep.subr.bf16.mxu0 %v748_v3  ;;  %v255_v35 = vsel %vm221_vm2, %v253_v31, 0.0  ;;  %653 = vmatpush3.bf16.msra.mxu1 %v289_v32  ;;  %v231_v56 = vadd.f32 %v230_v53, %v229_v29  ;;  %v224_v58 = vmax.f32 %v222_v28, %v223_v55  ;;  %v349_v28 = vpack.c.bf16 %v334_v24, %v333_v23  ;;  %v335_v31 = vld [vmem:[%s1013_s4 + $0x10] sm:$0xff]  ;;  %v336_v32 = vld [vmem:[%s1013_s4 + $0x18] sm:$0xff] }
  0xe3   :  { %678 = vmatprep.subr.bf16.mxu1 %v748_v3  ;;  %v256_v52 = vrot.slane %v255_v35, 4  ;;  %v242_v4 = vrot.slane %v241_v2, 4  ;;  %v350_v33 = vpack.c.bf16 %v336_v32, %v335_v31  ;;  %v347_v53 = vld [vmem:[%s1013_s4 + $0x70] sm:$0xff]  ;;  %v477_v62 = vshrl.u32 %v476_v61, 7 }
  0xe4   :  { %v232_v59 = vrot.slane %v231_v56, 2  ;;  %v225_v63 = vrot.slane %v224_v58, 2 }
  0xe5   :  { %661 = vmatpush3.bf16.msra.mxu0 %v374_v30  ;;  %v257_v54 = vadd.f32 %v256_v52, %v255_v35  ;;  %v243_v8 = vmax.f32 %v241_v2, %v242_v4  ;;  %v338_v35 = vld [vmem:[%s1013_s4 + $0x28] sm:$0xff]  ;;  %v474_v2 = vld [vmem:[%s1016_s7] sm:$0x1] }
  0xe6   :  { %662 = vmatprep.subr.bf16.mxu0 %v748_v3  ;;  %v233_v0 = vadd.f32 %v232_v59, %v231_v56  ;;  %v226_v5 = vmax.f32 %v224_v58, %v225_v63  ;;  %v478_v63 = vsub.s32 0, %v477_v62 }
  0xe7   :  { %v258_v57 = vrot.slane %v257_v54, 2  ;;  %v244_v9 = vrot.slane %v243_v8, 2 }
  0xe8   :  { %v234_v6 = vrot.slane %v233_v0, 1  ;;  %v227_v10 = vrot.slane %v226_v5, 1 }
  0xe9   :  { %663 = vmatpush3.bf16.msra.mxu0 %v375_v36  ;;  %v259_v60 = vadd.f32 %v258_v57, %v257_v54  ;;  %v245_v13 = vmax.f32 %v243_v8, %v244_v9  ;;  %v351_v36 = vpack.c.bf16 %v338_v35, %v337_v34  ;;  %v348_v54 = vld [vmem:[%s1013_s4 + $0x78] sm:$0xff] }
  0xea   :  { %664 = vmatprep.subr.bf16.mxu0 %v748_v3  ;;  %v235_v11 = vadd.f32 %v234_v6, %v233_v0  ;;  %v228_v15 = vmax.f32 %v226_v5, %v227_v10  ;;  %v356_v55 = vpack.c.bf16 %v348_v54, %v347_v53  ;;  %v479_v10 = vrot.slane %v474_v2, %v478_v63 }
  0xeb   :  { %v260_v1 = vrot.slane %v259_v60, 1  ;;  %v246_v14 = vrot.slane %v245_v13, 1 }
  0xec   :  { %v236_v16 = vmul.f32 0.14285715, %v235_v11 }
  0xed   :  { %665 = vmatpush3.bf16.msra.mxu0 %v376_v39  ;;  %v261_v7 = vadd.f32 %v260_v1, %v259_v60  ;;  %v247_v18 = vmax.f32 %v245_v13, %v246_v14  ;;  %v352_v39 = vpack.c.bf16 %v340_v38, %v339_v37  ;;  %v601_v1 = vld [vmem:[%s1015_s6] ss:$0 sm:$0xff]  ;;  %s751_s6 = smov [#allocation2]  }
  0xee   :  { %666 = vmatprep.subr.bf16.mxu0 %v748_v3  ;;  %s576_s7 = sshll.u32 %s751_s6, 4  ;;  %s577_s7 = int_to_ptr.vmem [resolvable:$true] %s576_s7 }
  0xef   :  { %v262_v12 = vmul.f32 0.14285715, %v261_v7  ;;  %v265_v19 = vrot.slane %v247_v18, 7  ;;  %s724_s0 = scalar_lea.vmem %s577_s7, 256  ;;  %p729_p1 = scmp.lt.s32.totalorder %s577_s7, %s577_s7 }
  0xf0   :  { %p725_p0 = scmp.ne.s32.totalorder %s577_s7, %s724_s0  ;;  %p730_p2 = scmp.lt.s32.totalorder %s724_s0, %s724_s0 }
  0xf1   :  { %667 = vmatpush3.bf16.msra.mxu0 %v377_v42  ;;  %v266_v17 = vrot.slane %v262_v12, 7  ;;  %v269_v20 = vsel %vm250_vm3, %v228_v15, %v265_v19  ;;  %v353_v42 = vpack.c.bf16 %v342_v41, %v341_v40 }
  0xf2   :  { %668 = vmatprep.subr.bf16.mxu0 %v748_v3  ;;  %p731_p3 = por %p730_p2, %p729_p1 }
  0xf3   :  { %v270_v21 = vsel %vm250_vm3, %v236_v16, %v266_v17 }
  0xf4   :  { %v273_v22 = vcombine.low %v269_v20, %v270_v21  ;;  %p732_p4 = pnand %p731_p3, %p725_p0 }
  0xf5   :  { %669 = vmatpush3.bf16.msra.mxu0 %v378_v45  ;;  %v354_v45 = vpack.c.bf16 %v344_v44, %v343_v43 }
  0xf6   :  { %670 = vmatprep.subr.bf16.mxu0 %v748_v3  ;;  %599 = vst.sshfl [vmem:[%s1017_s8] sm:$0x33 pattern:$0x76325410] %v273_v22 }
  0xf9   :  { %671 = vmatpush3.bf16.msra.mxu0 %v379_v48  ;;  %v355_v48 = vpack.c.bf16 %v346_v47, %v345_v46 }
  0xfa   :  { %672 = vmatprep.subr.bf16.mxu0 %v748_v3 }
  0xfd   :  { %673 = vmatpush3.bf16.msra.mxu0 %v380_v51 }
 0x100   :  { %675 = vmatmul.mubr.bf16.vlgmr.msra.gmra.mrb[8].mxu0 %v284_v27 }
 0x101   :  { %702 = vmatprep.mubr.msk.f32.mxu0 %vm749_vm0, %v748_v3 }
 0x1b3   :  { %v210_v25 = vpop.f32.mrb[4].mxu0 }
 0x1b4   :  { %218 = vst.msk [vmem:[#allocation2] sm:$0xff] %vm217_vm6, %v210_v25  ;;  %v650_v26 = vpop.f32.mrb[5].mxu0 }
 0x1b5   :  { %v213_v27 = vpop.f32.mrb[6].mxu0 }
 0x1b6   :  { %220 = vst.msk [vmem:[#allocation2 + $0x8] sm:$0x3f] %vm219_vm7, %v213_v27  ;;  %v283_v29 = vpack.c.bf16 %v213_v27, %v210_v25  ;;  %v651_v30 = vpop.f32.mrb[7].mxu0 }
 0x1b8   :  { %655 = vmatmul.mubr.msk.bf16.vlgmr.msra.gmra.mrb[4].mxu1 %vm217_vm6, %v283_v29 }
 0x1b9   :  { %679 = vmatpush3.bf16.msra.mxu1 %v349_v28  ;;  %694 = vmatprep.mubr.msk.bf16.mxu1 %vm749_vm0, %v748_v3 }
 0x1ba   :  { %680 = vmatprep.subr.bf16.mxu1 %v748_v3 }
 0x1bd   :  { %681 = vmatpush3.bf16.msra.mxu1 %v350_v33 }
 0x1be   :  { %682 = vmatprep.subr.bf16.mxu1 %v748_v3 }
 0x1c1   :  { %683 = vmatpush3.bf16.msra.mxu1 %v351_v36 }
 0x1c2   :  { %684 = vmatprep.subr.bf16.mxu1 %v748_v3 }
 0x1c5   :  { %685 = vmatpush3.bf16.msra.mxu1 %v352_v39 }
 0x1c6   :  { %686 = vmatprep.subr.bf16.mxu1 %v748_v3 }
 0x1c9   :  { %687 = vmatpush3.bf16.msra.mxu1 %v353_v42 }
 0x1ca   :  { %688 = vmatprep.subr.bf16.mxu1 %v748_v3 }
 0x1cd   :  { %689 = vmatpush3.bf16.msra.mxu1 %v354_v45 }
 0x1ce   :  { %690 = vmatprep.subr.bf16.mxu1 %v748_v3 }
 0x1d1   :  { %691 = vmatpush3.bf16.msra.mxu1 %v355_v48 }
 0x1d2   :  { %692 = vmatprep.subr.bf16.mxu1 %v748_v3  ;;  %v750_v3 = vmov 0.0|0.0  }
 0x1d3   :  { %v415_v49 = vpop.f32.mrb[8].mxu0  ;;  %709 = vmatprep.subr.bf16.mxu0 %v750_v3 }
 0x1d4   :  { %v676_v50 = vpop.f32.mrb[9].mxu0 }
 0x1d5   :  { %v418_v51 = vpop.f32.mrb[10].mxu0  ;;  %693 = vmatpush3.bf16.msra.mxu1 %v356_v55 }
 0x1d6   :  { %v677_v52 = vpop.f32.mrb[11].mxu0 }
 0x28b   :  { %v325_v56 = vpop.f32.mrb[4].mxu1 }
 0x28c   :  { %v656_v57 = vpop.f32.mrb[5].mxu1 }
 0x28d   :  { %v328_v58 = vpop.f32.mrb[6].mxu1 }
 0x28e   :  { %v332_v59 = vpack.c.bf16 %v328_v58, %v325_v56  ;;  %v657_v60 = vpop.f32.mrb[7].mxu1 }
 0x290   :  { %695 = vmatmul.mubr.bf16.vlgmr.msra.gmra.mrb[8].mxu1 %v332_v59 }
 0x363   :  { %v456_v0 = vpop.f32.mrb[8].mxu1 }
 0x364   :  { %v457_v4 = vadd.f32 %v456_v0, %v415_v49  ;;  %v696_v5 = vpop.f32.mrb[9].mxu1 }
 0x365   :  { %v459_v6 = vpop.f32.mrb[10].mxu1 }
 0x366   :  { %v470_v7 = vadd.f32 %v601_v1, %v457_v4  ;;  %v460_v8 = vadd.f32 %v459_v6, %v418_v51  ;;  %v697_v9 = vpop.f32.mrb[11].mxu1 }
 0x368   :  { %v472_v11 = vmax.f32 %v470_v7, 0.0  ;;  %v471_v12 = vadd.f32 %v601_v1, %v460_v8 }
 0x36a   :  { %v473_v13 = vmax.f32 %v471_v12, 0.0  ;;  %v481_v14 = vmul.f32 %v479_v10, %v472_v11 }
 0x36c   :  { %483 = vadd.xlane.f32.xlu0 %v481_v14  ;;  %v710_v15 = vpack.c.bf16 %v473_v13, %v472_v11  ;;  %v482_v16 = vmul.f32 %v479_v10, %v473_v13 }
 0x36e   :  { %711 = vmatpush3.bf16.xpose.msra.mxu0 %v710_v15  ;;  %v485_v17 = vsel %vm239_vm5, %v482_v16, 0.0 }
 0x370   :  { %486 = vadd.xlane.f32.xlu0 %v485_v17 }
 0x375   :  { %703 = vmatmul.mubr.f32.vlgmr.msra.gmra.mrb[2].mxu0 %v474_v2 }
 0x376   :  { %735 = shalt.err (!%p732_p4)
}
 0x377   :  { %s736_s29 = scalar_lea.hbm %s1019_s10, 256 }
 0x378   :  { %p737_p5 = scmp.ne.s32.totalorder %s1019_s10, %s736_s29  ;;  %p740_p6 = scmp.lt.u32.totalorder %s736_s29, %s1019_s10 }
 0x37a   :  { %p742_p7 = pnand %p740_p6, %p737_p5 }
 0x37c   :  { %745 = shalt.err (!%p742_p7)
}
 0x37d   :  { %s752_s15 = smov 128   ;;  %s753_s16 = smov 8   ;;  %vm561_vm8 = vcmask 106496  }
 0x37e   :  { %582 = dma.vmem_to_hbm [thread:$0]  %s577_s7, 256, %s1019_s10, [#allocation3], %s752_s15, %s752_s15, %s753_s16  }
 0x3f9   :  { %v484_v18 = vpop.xlane.xlu0 %483 }
 0x3fa   :  { %718 = vtanh.f32 %v484_v18 }
 0x3fd   :  { %v487_v19 = vpop.xlane.xlu0 %486 }
 0x3fe   :  { %720 = vtanh.f32 %v487_v19 }
 0x404   :  { %v719_v20 = vpop.eup %718 }
 0x405   :  { %v563_v21 = vmul.f32 %v719_v20, %v472_v11 }
 0x407   :  { %565 = vst [vmem:[%s1018_s9] sm:$0xff] %v563_v21 }
 0x408   :  { %v721_v22 = vpop.eup %720 }
 0x409   :  { %v564_v23 = vmul.f32 %v721_v22, %v473_v13 }
 0x40b   :  { %566 = vst [vmem:[%s1018_s9 + $0x8] sm:$0x3f] %v564_v23 }
 0x448   :  { %v556_v24 = vpop.f32.mrb[2].mxu0 }
 0x449   :  { %722 = vtanh.f32 %v556_v24  ;;  %v704_v25 = vpop.f32.mrb[3].mxu0 }
 0x453   :  { %v723_v26 = vpop.eup %722 }
 0x454   :  { %562 = vst.msk [vmem:[%s1020_s11] sm:$0x1] %vm561_vm8, %v723_v26 }
 0x455   :  { %746 = dma.done.wait [#allocation3], 256  }
 0x456   :  { %747 = vsyncadd [#allocation3], 4294967040 }
 0x457   :  { %594 = vsyncpa [#allocation3], 1 }

// kernel: net_forward.7
= control target key start
LH: loop header
LB: loop body
LE: loop exit
PB: predicated region body
PF: predicated region fallthrough
CT: control target
= control target key end

     0   :  { %vm48_vm0 = vcmask 1045504   ;;  %vm591_vm1 = vmmov 1   ;;  %vm41_vm3 = vcmask 113664   ;;  %s879_s0 = inlined_call_operand.vmem [shape: f32[12,14], index: 0, kind: input, shape index: {}]   ;;  %s880_s1 = inlined_call_operand.vmem [shape: f32[14,128], index: 1, kind: input, shape index: {}]   ;;  %s881_s2 = inlined_call_operand.vmem [shape: f32[2,256], index: 2, kind: input, shape index: {}]   ;;  %s882_s3 = inlined_call_operand.vmem [shape: f32[2,256], index: 3, kind: input, shape index: {}]   ;;  %s883_s4 = inlined_call_operand.vmem [shape: f32[256,128], index: 4, kind: input, shape index: {}]   ;;  %s884_s5 = inlined_call_operand.vmem [shape: f32[1,128], index: 5, kind: input, shape index: {}]   ;;  %s885_s6 = inlined_call_operand.vmem [shape: f32[128,64], index: 6, kind: input, shape index: {}]   ;;  %s886_s7 = inlined_call_operand.vmem [shape: f32[1,64], index: 7, kind: input, shape index: {}]   ;;  %s887_s8 = inlined_call_operand.vmem [shape: f32[64,6], index: 8, kind: input, shape index: {}]   ;;  %s888_s9 = inlined_call_operand.vmem [shape: f32[1,6], index: 9, kind: input, shape index: {}]   ;;  %s889_s10 = inlined_call_operand.hbm [shape: f32[2,6], index: 10, kind: output, shape index: {}]  }
   0x1   :  { %v39_v0 = vld [vmem:[%s880_s1] sm:$0xff]  ;;  %v40_v1 = vld [vmem:[%s880_s1 + $0x8] sm:$0x3f]  ;;  %vm553_vm2 = vmpackc.low %vm48_vm0, %vm591_vm1 }
   0x2   :  { %v37_v2 = vld [vmem:[%s879_s0] sm:$0xff]  ;;  %v552_v3 = vpack.c.bf16 %v40_v1, %v39_v0 }
   0x3   :  { %517 = vmatprep.mubr.msk.f32.mxu0 %vm41_vm3, %v37_v2 }
   0x4   :  { %15 = vsyncpa [#allocation3], 0  ;;  %554 = vmatprep.subr.msk.bf16.mxu0 %vm553_vm2, %v552_v3  ;;  %v38_v4 = vld [vmem:[%s879_s0 + $0x8] sm:$0xf]  ;;  %v221_v5 = vld [vmem:[%s883_s4 + $0x80] sm:$0xff]  ;;  %v592_v56 = vmov 0.0  }
   0x5   :  { %557 = vmatpush3.bf16.msk.msra.mxu0 %vm553_vm2, %v552_v3  ;;  %v222_v6 = vld [vmem:[%s883_s4 + $0x88] sm:$0xff]  ;;  %v205_v8 = vld [vmem:[%s883_s4] sm:$0xff]  ;;  %v223_v11 = vld [vmem:[%s883_s4 + $0x90] sm:$0xff]  ;;  %vm144_vm4 = vcmask 1043456   ;;  %vm142_vm5 = vcmask 1047558   ;;  %vm155_vm6 = vcmask 1041408  }
   0x6   :  { %v245_v7 = vpack.c.bf16 %v222_v6, %v221_v5  ;;  %v206_v9 = vld [vmem:[%s883_s4 + $0x8] sm:$0xff]  ;;  %v224_v12 = vld [vmem:[%s883_s4 + $0x98] sm:$0xff]  ;;  %v207_v14 = vld [vmem:[%s883_s4 + $0x10] sm:$0xff]  ;;  %520 = vmatprep.subr.bf16.mxu0 %v592_v56  ;;  %vm174_vm7 = vcmask 1040384   ;;  %vm594_vm8 = vmmov 0   ;;  %vm394_vm9 = vcmask 523264  }
   0x7   :  { %v237_v10 = vpack.c.bf16 %v206_v9, %v205_v8  ;;  %v246_v13 = vpack.c.bf16 %v224_v12, %v223_v11  ;;  %v208_v15 = vld [vmem:[%s883_s4 + $0x18] sm:$0xff]  ;;  %v225_v17 = vld [vmem:[%s883_s4 + $0xa0] sm:$0xff]  ;;  %v226_v18 = vld [vmem:[%s883_s4 + $0xa8] sm:$0xff]  ;;  %vm438_vm10 = vcmask 41984  }
   0x8   :  { %518 = vmatmul.mubr.msk.f32.vlgmr.msra.gmra.mrb[0].mxu0 %vm41_vm3, %v38_v4  ;;  %477 = vmatprep.subr.bf16.mxu1 %v245_v7  ;;  %v238_v16 = vpack.c.bf16 %v208_v15, %v207_v14  ;;  %v247_v19 = vpack.c.bf16 %v226_v18, %v225_v17  ;;  %v209_v20 = vld [vmem:[%s883_s4 + $0x20] sm:$0xff]  ;;  %v210_v21 = vld [vmem:[%s883_s4 + $0x28] sm:$0xff]  ;;  %v227_v23 = vld [vmem:[%s883_s4 + $0xb0] sm:$0xff] }
   0x9   :  { %478 = vmatpush3.bf16.msra.mxu1 %v237_v10  ;;  %v239_v22 = vpack.c.bf16 %v210_v21, %v209_v20  ;;  %v228_v24 = vld [vmem:[%s883_s4 + $0xb8] sm:$0xff]  ;;  %v211_v26 = vld [vmem:[%s883_s4 + $0x30] sm:$0xff]  ;;  %v229_v29 = vld [vmem:[%s883_s4 + $0xc0] sm:$0xff]  ;;  %536 = vmatprep.mubr.msk.bf16.mxu0 %vm594_vm8, %v592_v56 }
   0xa   :  { %479 = vmatprep.subr.bf16.mxu1 %v246_v13  ;;  %v248_v25 = vpack.c.bf16 %v228_v24, %v227_v23  ;;  %v212_v27 = vld [vmem:[%s883_s4 + $0x38] sm:$0xff]  ;;  %v230_v30 = vld [vmem:[%s883_s4 + $0xc8] sm:$0xff]  ;;  %v213_v31 = vld [vmem:[%s883_s4 + $0x40] sm:$0xff] }
   0xb   :  { %v240_v28 = vpack.c.bf16 %v212_v27, %v211_v26  ;;  %v249_v32 = vpack.c.bf16 %v230_v30, %v229_v29  ;;  %v214_v33 = vld [vmem:[%s883_s4 + $0x48] sm:$0xff]  ;;  %v231_v34 = vld [vmem:[%s883_s4 + $0xd0] sm:$0xff]  ;;  %v232_v35 = vld [vmem:[%s883_s4 + $0xd8] sm:$0xff] }
   0xc   :  { %v241_v36 = vpack.c.bf16 %v214_v33, %v213_v31  ;;  %v250_v37 = vpack.c.bf16 %v232_v35, %v231_v34  ;;  %v215_v38 = vld [vmem:[%s883_s4 + $0x50] sm:$0xff]  ;;  %v216_v39 = vld [vmem:[%s883_s4 + $0x58] sm:$0xff]  ;;  %v233_v40 = vld [vmem:[%s883_s4 + $0xe0] sm:$0xff] }
   0xd   :  { %480 = vmatpush3.bf16.msra.mxu1 %v238_v16  ;;  %v234_v41 = vld [vmem:[%s883_s4 + $0xe8] sm:$0xff]  ;;  %v242_v42 = vpack.c.bf16 %v216_v39, %v215_v38  ;;  %v217_v44 = vld [vmem:[%s883_s4 + $0x60] sm:$0xff]  ;;  %v235_v46 = vld [vmem:[%s883_s4 + $0xf0] sm:$0xff]  ;;  %v593_v38 = vmov 1983009808  }
   0xe   :  { %481 = vmatprep.subr.bf16.mxu1 %v247_v19  ;;  %v251_v43 = vpack.c.bf16 %v234_v41, %v233_v40  ;;  %v218_v45 = vld [vmem:[%s883_s4 + $0x68] sm:$0xff]  ;;  %v236_v47 = vld [vmem:[%s883_s4 + $0xf8] sm:$0xff]  ;;  %v219_v50 = vld [vmem:[%s883_s4 + $0x70] sm:$0xff]  ;;  %v184_v39 = vunpack.c.l.s4 %v593_v38  ;;  %v186_v40 = vlaneseq }
   0xf   :  { %v243_v48 = vpack.c.bf16 %v218_v45, %v217_v44  ;;  %v252_v49 = vpack.c.bf16 %v236_v47, %v235_v46  ;;  %v220_v51 = vld [vmem:[%s883_s4 + $0x78] sm:$0xff]  ;;  %v302_v53 = vld [vmem:[%s885_s6] sm:$0xff]  ;;  %v303_v54 = vld [vmem:[%s885_s6 + $0x8] sm:$0xff] }
  0x10   :  { %v244_v52 = vpack.c.bf16 %v220_v51, %v219_v50  ;;  %v304_v55 = vld [vmem:[%s885_s6 + $0x10] sm:$0xff]  ;;  %v318_v57 = vpack.c.bf16 %v303_v54, %v302_v53  ;;  %v305_v58 = vld [vmem:[%s885_s6 + $0x18] sm:$0xff]  ;;  %v306_v60 = vld [vmem:[%s885_s6 + $0x20] sm:$0xff]  ;;  %v185_v47 = vunpack.c.0.s8 %v184_v39 }
  0x11   :  { %482 = vmatpush3.bf16.msra.mxu1 %v239_v22  ;;  %v319_v59 = vpack.c.bf16 %v305_v58, %v304_v55  ;;  %v307_v61 = vld [vmem:[%s885_s6 + $0x28] sm:$0xff]  ;;  %v308_v63 = vld [vmem:[%s885_s6 + $0x30] sm:$0xff]  ;;  %v309_v0 = vld [vmem:[%s885_s6 + $0x38] sm:$0xff] }
  0x12   :  { %483 = vmatprep.subr.bf16.mxu1 %v248_v25  ;;  %521 = vmatpush3.bf16.msra.mxu0 %v318_v57  ;;  %v320_v62 = vpack.c.bf16 %v307_v61, %v306_v60  ;;  %v321_v1 = vpack.c.bf16 %v309_v0, %v308_v63  ;;  %v310_v2 = vld [vmem:[%s885_s6 + $0x40] sm:$0xff]  ;;  %v311_v3 = vld [vmem:[%s885_s6 + $0x48] sm:$0xff]  ;;  %v312_v5 = vld [vmem:[%s885_s6 + $0x50] sm:$0xff] }
  0x13   :  { %522 = vmatprep.subr.bf16.mxu0 %v592_v56  ;;  %v322_v4 = vpack.c.bf16 %v311_v3, %v310_v2  ;;  %v313_v6 = vld [vmem:[%s885_s6 + $0x58] sm:$0xff]  ;;  %v177_v51 = vld [vmem:[%s881_s2] sm:$0xf]  ;;  %v315_v3 = vld [vmem:[%s885_s6 + $0x68] sm:$0xff] }
  0x14   :  { %v323_v7 = vpack.c.bf16 %v313_v6, %v312_v5  ;;  %v178_v54 = vld [vmem:[%s882_s3] sm:$0xf]  ;;  %v316_v5 = vld [vmem:[%s885_s6 + $0x70] sm:$0xff]  ;;  %v317_v6 = vld [vmem:[%s885_s6 + $0x78] sm:$0xff] }
  0x15   :  { %484 = vmatpush3.bf16.msra.mxu1 %v240_v28  ;;  %v179_v58 = vadd.f32 %v178_v54, %v177_v51  ;;  %v314_v2 = vld [vmem:[%s885_s6 + $0x60] sm:$0xff] }
  0x16   :  { %485 = vmatprep.subr.bf16.mxu1 %v249_v32  ;;  %523 = vmatpush3.bf16.msra.mxu0 %v319_v59 }
  0x17   :  { %524 = vmatprep.subr.bf16.mxu0 %v592_v56 }
  0x19   :  { %486 = vmatpush3.bf16.msra.mxu1 %v241_v36 }
  0x1a   :  { %487 = vmatprep.subr.bf16.mxu1 %v250_v37  ;;  %525 = vmatpush3.bf16.msra.mxu0 %v320_v62 }
  0x1b   :  { %526 = vmatprep.subr.bf16.mxu0 %v592_v56 }
  0x1d   :  { %488 = vmatpush3.bf16.msra.mxu1 %v242_v42 }
  0x1e   :  { %489 = vmatprep.subr.bf16.mxu1 %v251_v43  ;;  %527 = vmatpush3.bf16.msra.mxu0 %v321_v1 }
  0x1f   :  { %528 = vmatprep.subr.bf16.mxu0 %v592_v56 }
  0x21   :  { %490 = vmatpush3.bf16.msra.mxu1 %v243_v48  ;;  %v187_v48 = vshrl.u32 %v186_v40, 7 }
  0x22   :  { %491 = vmatprep.subr.bf16.mxu1 %v252_v49  ;;  %529 = vmatpush3.bf16.msra.mxu0 %v322_v4  ;;  %v324_v4 = vpack.c.bf16 %v315_v3, %v314_v2 }
  0x23   :  { %530 = vmatprep.subr.bf16.mxu0 %v592_v56  ;;  %v188_v55 = vsub.s32 %v185_v47, %v187_v48 }
  0x25   :  { %492 = vmatpush3.bf16.msra.mxu1 %v244_v52 }
  0x26   :  { %540 = vmatprep.subr.bf16.mxu1 %v592_v56  ;;  %531 = vmatpush3.bf16.msra.mxu0 %v323_v7  ;;  %v325_v7 = vpack.c.bf16 %v317_v6, %v316_v5 }
  0x27   :  { %532 = vmatprep.subr.bf16.mxu0 %v592_v56 }
  0x2a   :  { %533 = vmatpush3.bf16.msra.mxu0 %v324_v4 }
  0x2b   :  { %534 = vmatprep.subr.bf16.mxu0 %v592_v56 }
  0x2e   :  { %535 = vmatpush3.bf16.msra.mxu0 %v325_v7 }
  0xdb   :  { %v519_v8 = vpop.f32.mrb[0].mxu0 }
  0xdc   :  { %v145_v9 = vsel %vm144_vm4, %v519_v8, -inf  ;;  %v157_v10 = vrot.slane %v519_v8, 6  ;;  %v118_v11 = vpop.f32.mrb[1].mxu0  ;;  %v375_v8 = vld [vmem:[%s887_s8] sm:$0xff] }
  0xdd   :  { %v127_v12 = vsel %vm48_vm0, %v118_v11, -inf  ;;  %v134_v13 = vsel %vm48_vm0, %v118_v11, 0.0  ;;  %v143_v14 = vsel %vm142_vm5, %v118_v11, -inf  ;;  %v156_v15 = vrot.slane %v118_v11, 6 }
  0xde   :  { %v128_v16 = vrot.slane %v127_v12, 4  ;;  %v135_v17 = vrot.slane %v134_v13, 4  ;;  %v146_v18 = vmax.f32 %v143_v14, %v145_v9  ;;  %v376_v9 = vld [vmem:[%s887_s8 + $0x8] sm:$0xff] }
  0xdf   :  { %v158_v19 = vsel %vm155_vm6, %v156_v15, %v157_v10  ;;  %v377_v10 = vld [vmem:[%s887_s8 + $0x10] sm:$0xff]  ;;  %v383_v11 = vpack.c.bf16 %v376_v9, %v375_v8  ;;  %v469_v15 = vld [vmem:[%s884_s5] ss:$0 sm:$0xff] }
  0xe0   :  { %v129_v20 = vmax.f32 %v127_v12, %v128_v16  ;;  %v136_v21 = vadd.f32 %v135_v17, %v134_v13  ;;  %v147_v22 = vrot.slane %v146_v18, 4  ;;  %v160_v23 = vsel %vm48_vm0, %v158_v19, 0.0  ;;  %v378_v12 = vld [vmem:[%s887_s8 + $0x18] sm:$0xff] }
  0xe1   :  { %v161_v24 = vrot.slane %v160_v23, 4  ;;  %v384_v13 = vpack.c.bf16 %v378_v12, %v377_v10 }
  0xe2   :  { %v130_v25 = vrot.slane %v129_v20, 2  ;;  %v137_v26 = vrot.slane %v136_v21, 2  ;;  %v148_v27 = vmax.f32 %v146_v18, %v147_v22 }
  0xe3   :  { %v162_v28 = vadd.f32 %v161_v24, %v160_v23  ;;  %v379_v23 = vld [vmem:[%s887_s8 + $0x20] sm:$0xff]  ;;  %v380_v24 = vld [vmem:[%s887_s8 + $0x28] sm:$0xff] }
  0xe4   :  { %v131_v29 = vmax.f32 %v129_v20, %v130_v25  ;;  %v138_v30 = vadd.f32 %v137_v26, %v136_v21  ;;  %v149_v31 = vrot.slane %v148_v27, 2  ;;  %v385_v25 = vpack.c.bf16 %v380_v24, %v379_v23  ;;  %v381_v26 = vld [vmem:[%s887_s8 + $0x30] sm:$0xff] }
  0xe5   :  { %v163_v32 = vrot.slane %v162_v28, 2 }
  0xe6   :  { %v150_v33 = vmax.f32 %v148_v27, %v149_v31  ;;  %v139_v34 = vrot.slane %v138_v30, 1  ;;  %v132_v36 = vrot.slane %v131_v29, 1  ;;  %v382_v27 = vld [vmem:[%s887_s8 + $0x38] sm:$0xff] }
  0xe7   :  { %v164_v35 = vadd.f32 %v163_v32, %v162_v28  ;;  %v386_v28 = vpack.c.bf16 %v382_v27, %v381_v26 }
  0xe8   :  { %v151_v37 = vrot.slane %v150_v33, 1  ;;  %v140_v43 = vadd.f32 %v139_v34, %v138_v30  ;;  %v133_v45 = vmax.f32 %v131_v29, %v132_v36  ;;  %v470_v29 = vld [vmem:[%s886_s7] ss:$0 sm:$0xff]  ;;  %s595_s7 = smov [#allocation2]  }
  0xe9   :  { %v165_v41 = vrot.slane %v164_v35, 1  ;;  %v471_v36 = vld [vmem:[%s888_s9] ss:$0 sm:$0xff]  ;;  %s458_s8 = sshll.u32 %s595_s7, 4  ;;  %s459_s8 = int_to_ptr.vmem [resolvable:$true] %s458_s8 }
  0xea   :  { %v152_v42 = vmax.f32 %v150_v33, %v151_v37  ;;  %v141_v52 = vmul.f32 0.16666667, %v140_v43  ;;  %s567_s9 = scalar_lea.vmem %s459_s8, 32  ;;  %p572_p1 = scmp.lt.s32.totalorder %s459_s8, %s459_s8 }
  0xeb   :  { %v166_v44 = vadd.f32 %v165_v41, %v164_v35  ;;  %p568_p0 = scmp.ne.s32.totalorder %s459_s8, %s567_s9  ;;  %p573_p2 = scmp.lt.s32.totalorder %s567_s9, %s567_s9 }
  0xec   :  { %v170_v46 = vrot.slane %v152_v42, 7 }
  0xed   :  { %v167_v49 = vmul.f32 0.16666667, %v166_v44  ;;  %p574_p3 = por %p573_p2, %p572_p1 }
  0xee   :  { %v175_v50 = vsel %vm174_vm7, %v133_v45, %v170_v46 }
  0xef   :  { %v171_v53 = vrot.slane %v167_v49, 7  ;;  %p575_p4 = pnand %p574_p3, %p568_p0 }
  0xf1   :  { %v176_v57 = vsel %vm174_vm7, %v141_v52, %v171_v53 }
  0xf2   :  { %v182_v59 = vcombine.low %v175_v50, %v176_v57 }
  0xf4   :  { %v189_v60 = vrot.slane %v182_v59, %v188_v55 }
  0xf6   :  { %v191_v61 = vadd.f32 %v189_v60, %v179_v58 }
  0xf8   :  { %v199_v62 = vrot.slane %v191_v61, %v188_v55 }
  0xfa   :  { %v200_v63 = vcombine.high %v199_v62, %v199_v62  ;;  %v203_v1 = vpack.c.bf16 %v199_v62, %v199_v62 }
  0xfc   :  { %v204_v0 = vpack.c.bf16 %v200_v63, %v200_v63 }
  0xfe   :  { %292 = vmatprep.mubr.bf16.mxu1 %v204_v0 }
  0xff   :  { %293 = vmatmul.mubr.bf16.vlgmr.msra.gmra.mrb[0].mxu1 %v203_v1 }
 0x100   :  { %548 = vmatprep.mubr.msk.bf16.mxu1 %vm594_vm8, %v592_v56  ;;  %541 = vmatpush3.bf16.msra.mxu1 %v383_v11 }
 0x101   :  { %542 = vmatprep.subr.bf16.mxu1 %v592_v56 }
 0x104   :  { %543 = vmatpush3.bf16.msra.mxu1 %v384_v13 }
 0x105   :  { %544 = vmatprep.subr.bf16.mxu1 %v592_v56 }
 0x108   :  { %545 = vmatpush3.bf16.msra.mxu1 %v385_v25 }
 0x109   :  { %546 = vmatprep.subr.bf16.mxu1 %v592_v56 }
 0x10c   :  { %547 = vmatpush3.bf16.msra.mxu1 %v386_v28 }
 0x1d2   :  { %v493_v14 = vpop.f32.mrb[0].mxu1 }
 0x1d3   :  { %v494_v16 = vpop.f32.mrb[1].mxu1 }
 0x1d4   :  { %v495_v17 = vadd.f32 %v494_v16, %v493_v14  ;;  %v496_v18 = vpop.f32.mrb[2].mxu1 }
 0x1d5   :  { %v497_v19 = vpop.f32.mrb[3].mxu1 }
 0x1d6   :  { %v295_v20 = vadd.f32 %v495_v17, %v469_v15 }
 0x1d8   :  { %v300_v21 = vmax.f32 %v295_v20, 0.0 }
 0x1da   :  { %v301_v22 = vpack.c.bf16 %v300_v21, %v300_v21 }
 0x1dc   :  { %537 = vmatmul.mubr.bf16.vlgmr.msra.gmra.mrb[4].mxu0 %v301_v22 }
 0x2af   :  { %v367_v30 = vpop.f32.mrb[4].mxu0 }
 0x2b0   :  { %v368_v31 = vadd.f32 %v470_v29, %v367_v30  ;;  %v538_v32 = vpop.f32.mrb[5].mxu0 }
 0x2b1   :  { %v370_v33 = vpop.f32.mrb[6].mxu0 }
 0x2b2   :  { %v373_v34 = vmax.f32 %v368_v31, 0.0  ;;  %v539_v56 = vpop.f32.mrb[7].mxu0 }
 0x2b4   :  { %v374_v35 = vpack.c.bf16 %v373_v34, %v373_v34 }
 0x2b6   :  { %549 = vmatmul.mubr.msk.bf16.vlgmr.msra.gmra.mrb[4].mxu1 %vm394_vm9, %v374_v35 }
 0x389   :  { %v432_v37 = vpop.f32.mrb[4].mxu1 }
 0x38a   :  { %v433_v38 = vadd.f32 %v471_v36, %v432_v37  ;;  %v550_v39 = vpop.f32.mrb[5].mxu1 }
 0x38b   :  { %v435_v40 = vpop.f32.mrb[6].mxu1 }
 0x38c   :  { %v551_v41 = vpop.f32.mrb[7].mxu1  ;;  %v439_v42 = vsel %vm438_vm10, %v433_v38, -inf }
 0x38d   :  { %440 = vmax.xlane.f32.xlu0 %v439_v42 }
 0x41a   :  { %v441_v43 = vpop.xlane.xlu0 %440 }
 0x41b   :  { %v442_v44 = vsub.f32 %v433_v38, %v441_v43 }
 0x41d   :  { %v443_v45 = vmul.f32 1.442695, %v442_v44 }
 0x41f   :  { %563 = vpow2.f32 %v443_v45 }
 0x429   :  { %v564_v46 = vpop.eup %563 }
 0x42a   :  { %v445_v47 = vsel %vm438_vm10, %v564_v46, 0.0 }
 0x42b   :  { %446 = vadd.xlane.f32.xlu0 %v445_v47 }
 0x4b8   :  { %v447_v48 = vpop.xlane.xlu0 %446 }
 0x4b9   :  { %565 = vlog2.f32 %v447_v48 }
 0x4c3   :  { %v566_v49 = vpop.eup %565 }
 0x4c4   :  { %v449_v50 = vmul.f32 0.6931472, %v566_v49 }
 0x4c6   :  { %v450_v51 = vsub.f32 %v442_v44, %v449_v50 }
 0x4c8   :  { %451 = vst.msk [vmem:[#allocation2] sm:$0x3] %vm438_vm10, %v450_v51 }
 0x4c9   :  { %578 = shalt.err (!%p575_p4)
}
 0x4ca   :  { %s579_s25 = scalar_lea.hbm %s889_s10, 32 }
 0x4cb   :  { %p580_p5 = scmp.ne.s32.totalorder %s889_s10, %s579_s25  ;;  %p583_p6 = scmp.lt.u32.totalorder %s579_s25, %s889_s10 }
 0x4cd   :  { %p585_p7 = pnand %p583_p6, %p580_p5 }
 0x4cf   :  { %588 = shalt.err (!%p585_p7)
}
 0x4d0   :  { %461 = dma.vmem_to_hbm [thread:$0]  %s459_s8, 32, %s889_s10, [#allocation3]  }
 0x4d1   :  { %589 = dma.done.wait [#allocation3], 32  }
 0x4d2   :  { %590 = vsyncadd [#allocation3], 4294967264 }
 0x4d3   :  { %465 = vsyncpa [#allocation3], 1 }

</bundles_post_ra>
